<compile_context>
chip_gen: v7x
topology: tpu7x:2x2x1
jax: 0.10.0
libtpu: 0.0.40
codegen_flags: <defaults>
</compile_context>

<pallas_src>
import math
import functools

import jax
import jax.numpy as jnp
from jax.experimental import pallas as pl
from jax.experimental.pallas import tpu as pltpu

EPS = 1e-5  # nn.LayerNorm default

# Row indices of the packed per-layer vector tensor "vec_d" (each row width D).
_BQ, _BK, _BV, _BO, _LN1G, _LN1B, _LN2G, _LN2B, _B2 = range(9)
_VEC_D_ROWS = 16  # padded to a sublane multiple


# ----------------------------------------------------------------------------
# Fused kernel: posenc (layer 0) + one TransformerEncoderLayer per grid step
# ----------------------------------------------------------------------------

def fused_encoder_kernel(*refs, nhead, seq_len, sqrt_ninp, use_mask):
    if use_mask:
        (x_ref, pe_ref, mask_ref, wqkv_ref, wo_ref, w1_ref, w2_ref,
         vd_ref, vh_ref, o_ref, act_ref) = refs
    else:
        (x_ref, pe_ref, wqkv_ref, wo_ref, w1_ref, w2_ref,
         vd_ref, vh_ref, o_ref, act_ref) = refs
        mask_ref = None

    layer = pl.program_id(0)
    n_layers = pl.num_programs(0)

    # ---- positional encoding + sqrt(ninp) scaling, layer 0 only -------------
    # Spec order: posemb_layer(src) * sqrt(ninp)  ==  (src + pe) * sqrt(ninp);
    # dropout is identity (eval / p=0).
    @pl.when(layer == 0)
    def _init():
        act_ref[...] = (x_ref[...] + pe_ref[...]) * sqrt_ninp

    x = act_ref[...]                        # (M, D) f32, M = B*S (VMEM carry)
    M, D = x.shape
    S = seq_len
    B = M // S
    dh = D // nhead

    vd = vd_ref[0]                          # (16, D) f32 packed vectors
    b1 = vh_ref[0]                          # (1, nhid) f32

    xb = x.astype(jnp.bfloat16)

    # ---- fused QKV projection (1/sqrt(dh) already folded into W_q, b_q) -----
    qkv = jnp.dot(xb, wqkv_ref[0],
                  preferred_element_type=jnp.float32)        # (M, 3D) f32
    q = qkv[:, 0 * D:1 * D] + vd[_BQ:_BQ + 1]
    k = qkv[:, 1 * D:2 * D] + vd[_BK:_BK + 1]
    v = qkv[:, 2 * D:3 * D] + vd[_BV:_BV + 1]

    wo4 = wo_ref[0]                         # (nhead, dh, D) bf16
    mask = mask_ref[...] if use_mask else None   # (S, S) additive, f32

    # ---- multi-head attention: B-batched einsums, W_o folded per head -------
    attn = jnp.zeros((M, D), jnp.float32)
    for h in range(nhead):                  # static unroll (nhead small)
        sl = slice(h * dh, (h + 1) * dh)
        qh = q[:, sl].reshape(B, S, dh).astype(jnp.bfloat16)
        kh = k[:, sl].reshape(B, S, dh).astype(jnp.bfloat16)
        vh = v[:, sl].reshape(B, S, dh).astype(jnp.bfloat16)

        s = jnp.einsum('bqd,bkd->bqk', qh, kh,
                       preferred_element_type=jnp.float32)   # (B, S, S)
        if use_mask:
            s = s + mask
        m = jnp.max(s, axis=-1, keepdims=True)
        p = jnp.exp(s - m)
        denom = jnp.sum(p, axis=-1, keepdims=True)
        p = p * pl.reciprocal(denom, approx=True)

        oh = jnp.einsum('bqk,bkd->bqd', p.astype(jnp.bfloat16), vh,
                        preferred_element_type=jnp.float32)  # (B, S, dh)
        # fold output projection: accumulate  o_h @ W_o[h]
        attn = attn + jnp.dot(oh.reshape(M, dh).astype(jnp.bfloat16),
                              wo4[h], preferred_element_type=jnp.float32)
    attn = attn + vd[_BO:_BO + 1]

    # ---- residual + LayerNorm 1 (post-norm) ----------------------------------
    y = x + attn
    mu = jnp.mean(y, axis=-1, keepdims=True)
    var = jnp.mean((y - mu) ** 2, axis=-1, keepdims=True)
    y = (y - mu) * jax.lax.rsqrt(var + EPS) * vd[_LN1G:_LN1G + 1] \
        + vd[_LN1B:_LN1B + 1]

    # ---- feed-forward (relu) --------------------------------------------------
    h1 = jnp.dot(y.astype(jnp.bfloat16), w1_ref[0],
                 preferred_element_type=jnp.float32) + b1
    h1 = jnp.maximum(h1, 0.0)
    ff = jnp.dot(h1.astype(jnp.bfloat16), w2_ref[0],
                 preferred_element_type=jnp.float32) + vd[_B2:_B2 + 1]

    # ---- residual + LayerNorm 2 -----------------------------------------------
    z = y + ff
    mu2 = jnp.mean(z, axis=-1, keepdims=True)
    var2 = jnp.mean((z - mu2) ** 2, axis=-1, keepdims=True)
    z = (z - mu2) * jax.lax.rsqrt(var2 + EPS) * vd[_LN2G:_LN2G + 1] \
        + vd[_LN2B:_LN2B + 1]

    act_ref[...] = z                        # carry to next layer (stays in VMEM)

    @pl.when(layer == n_layers - 1)
    def _finalize():
        o_ref[...] = z


# ----------------------------------------------------------------------------
# Wrapper
# ----------------------------------------------------------------------------

def encoder_layer_forward(src, pe, params, *, ninp, nhead, his_mask):
    """(B, S, D) float32 -> (B, S, D) float32, matching Encoder_layer.forward."""
    # TODO(synk): src_key_padding_mask is not implemented (None path only);
    #             TransformerEncoder's final `norm` is assumed None.
    B, S, D = src.shape
    M = B * S
    L = params['w_qkv'].shape[0]

    x_flat = src.reshape(M, D)
    pe_flat = jnp.tile(pe, (B, 1))          # (M, D): row b*S+s -> pe[s]

    in_specs = [pl.BlockSpec((M, D), lambda l: (0, 0)),    # x (fetched once)
                pl.BlockSpec((M, D), lambda l: (0, 0))]    # pe
    args = [x_flat, pe_flat]
    if his_mask:
        mask = square_subsequent_mask(S)
        in_specs.append(pl.BlockSpec((S, S), lambda l: (0, 0)))
        args.append(mask)

    for name in ('w_qkv', 'w_out', 'w_ff1', 'w_ff2', 'vec_d', 'vec_h'):
        a = params[name]
        nz = a.ndim - 1
        in_specs.append(pl.BlockSpec((1,) + a.shape[1:],
                                     lambda l, _nz=nz: (l,) + (0,) * _nz))
        args.append(a)

    out = pl.pallas_call(
        functools.partial(fused_encoder_kernel, nhead=nhead, seq_len=S,
                          sqrt_ninp=math.sqrt(ninp), use_mask=his_mask),
        out_shape=jax.ShapeDtypeStruct((M, D), jnp.float32),
        grid=(L,),
        in_specs=in_specs,
        out_specs=pl.BlockSpec((M, D), lambda l: (0, 0)),
        scratch_shapes=[pltpu.VMEM((M, D), jnp.float32)],
        compiler_params=pltpu.CompilerParams(
            dimension_semantics=("arbitrary",)),
    )(*args)
    return out.reshape(B, S, D)


# ----------------------------------------------------------------------------
# Deterministic constants / parameters
# ----------------------------------------------------------------------------

def sinusoidal_pe(S, D):
    pos = jnp.arange(S, dtype=jnp.float32)[:, None]
    div = jnp.exp(jnp.arange(0, D, 2, dtype=jnp.float32) *
                  (-math.log(10000.0) / D))
    pe = jnp.zeros((S, D), jnp.float32)
    pe = pe.at[:, 0::2].set(jnp.sin(pos * div))
    pe = pe.at[:, 1::2].set(jnp.cos(pos * div))
    return pe


def square_subsequent_mask(S):
    # matches Encoder_layer._generate_square_subsequent_mask
    allowed = jnp.tril(jnp.ones((S, S), jnp.float32)) == 1.0
    return jnp.where(allowed, 0.0, -jnp.inf).astype(jnp.float32)


def init_stacked_params(key, D, nhid, nlayers, nhead):
    """Per-layer weights stacked along a leading layer axis.

    Matmul weights are stored (in, out) and bf16 (MXU-native, f32 accumulate);
    the 1/sqrt(dh) attention scale is folded into W_q (and b_q, zero here).
    W_o is stored per-head as (nhead, dh, D) so the kernel indexes head slabs
    without slicing packed bf16 rows.  Vector params are packed into vec_d
    (width D) and vec_h (width nhid).
    """
    dh = D // nhead
    att_scale = 1.0 / math.sqrt(dh)
    g = 0.02
    w_qkv, w_out, w_ff1, w_ff2, vec_d, vec_h = [], [], [], [], [], []
    for lk in jax.random.split(key, nlayers):
        k1, k2, k3, k4, k5, k6 = jax.random.split(lk, 6)

        def nrm(k, shape):
            return g * jax.random.normal(k, shape, jnp.float32)

        wq = nrm(k1, (D, D)) * att_scale      # fold softmax scale
        wk = nrm(k2, (D, D))
        wv = nrm(k3, (D, D))
        w_qkv.append(jnp.concatenate([wq, wk, wv], 1).astype(jnp.bfloat16))
        w_out.append(nrm(k4, (D, D)).reshape(nhead, dh, D).astype(jnp.bfloat16))
        w_ff1.append(nrm(k5, (D, nhid)).astype(jnp.bfloat16))
        w_ff2.append(nrm(k6, (nhid, D)).astype(jnp.bfloat16))

        vd = jnp.zeros((_VEC_D_ROWS, D), jnp.float32)
        vd = vd.at[_LN1G].set(1.0).at[_LN2G].set(1.0)
        # biases (_BQ/_BK/_BV/_BO/_B2, LN betas) are zero in this demo; a
        # nonzero b_q would also carry the att_scale fold.
        vec_d.append(vd)
        vec_h.append(jnp.zeros((1, nhid), jnp.float32))

    return {'w_qkv': jnp.stack(w_qkv), 'w_out': jnp.stack(w_out),
            'w_ff1': jnp.stack(w_ff1), 'w_ff2': jnp.stack(w_ff2),
            'vec_d': jnp.stack(vec_d), 'vec_h': jnp.stack(vec_h)}


# ----------------------------------------------------------------------------
# Main
# ----------------------------------------------------------------------------

if __name__ == "__main__":
    B, S, D = 2, 8, 32          # batch, sequence, ninp (embedding size)
    nhead, nhid, nlayers = 4, 64, 2
    his_mask = True             # causal additive mask

    key = jax.random.PRNGKey(0)
    kx, kp = jax.random.split(key)
    src = jax.random.normal(kx, (B, S, D), jnp.float32)

    pe = sinusoidal_pe(S, D)
    params = init_stacked_params(kp, D, nhid, nlayers, nhead)

    out = encoder_layer_forward(src, pe, params, ninp=D, nhead=nhead,
                                his_mask=his_mask)
    out = jax.block_until_ready(out)
    assert out.shape == (B, S, D)
    assert bool(jnp.all(jnp.isfinite(out)))
    print("KERNEL_OK")
</pallas_src>

<mosaic_0001>
module attributes {stable_mosaic.version = 11 : i64} {
  func.func @fused_encoder_kernel(%arg0: i32, %arg1: memref<16x32xf32, #tpu.memory_space<vmem>>, %arg2: memref<16x32xf32, #tpu.memory_space<vmem>>, %arg3: memref<8x8xf32, #tpu.memory_space<vmem>>, %arg4: memref<1x32x96xbf16, #tpu.memory_space<vmem>>, %arg5: memref<1x4x8x32xbf16, #tpu.memory_space<vmem>>, %arg6: memref<1x32x64xbf16, #tpu.memory_space<vmem>>, %arg7: memref<1x64x32xbf16, #tpu.memory_space<vmem>>, %arg8: memref<1x16x32xf32, #tpu.memory_space<vmem>>, %arg9: memref<1x1x64xf32, #tpu.memory_space<vmem>>, %arg10: memref<16x32xf32, #tpu.memory_space<vmem>>, %arg11: memref<16x32xf32, #tpu.memory_space<vmem>>) attributes {dimension_semantics = [#tpu.dimension_semantics<arbitrary>], iteration_bounds = array<i64: 2>, scalar_prefetch = 0 : i64, scratch_operands = 1 : i64, tpu.core_type = #tpu.core_type<tc>, window_params = [{pipeline_mode = #tpu.pipeline_mode<synchronous>, transform_indices = @transform_0, window_bounds = array<i64: 16, 32>}, {pipeline_mode = #tpu.pipeline_mode<synchronous>, transform_indices = @transform_1, window_bounds = array<i64: 16, 32>}, {pipeline_mode = #tpu.pipeline_mode<synchronous>, transform_indices = @transform_2, window_bounds = array<i64: 8, 8>}, {transform_indices = @transform_3, window_bounds = array<i64: 1, 32, 96>}, {transform_indices = @transform_4, window_bounds = array<i64: 1, 4, 8, 32>}, {transform_indices = @transform_5, window_bounds = array<i64: 1, 32, 64>}, {transform_indices = @transform_6, window_bounds = array<i64: 1, 64, 32>}, {transform_indices = @transform_7, window_bounds = array<i64: 1, 16, 32>}, {transform_indices = @transform_8, window_bounds = array<i64: 1, 1, 64>}, {pipeline_mode = #tpu.pipeline_mode<synchronous>, transform_indices = @transform_9, window_bounds = array<i64: 16, 32>}]} {
    %c0_i32 = arith.constant 0 : i32
    %0 = arith.cmpi eq, %arg0, %c0_i32 : i32
    %1 = arith.extui %0 : i1 to i32
    %c0_i32_0 = arith.constant 0 : i32
    %2 = arith.cmpi ne, %1, %c0_i32_0 : i32
    scf.if %2 {
      %c0_60 = arith.constant 0 : index
      %c0_61 = arith.constant 0 : index
      %224 = vector.load %arg1[%c0_60, %c0_61] : memref<16x32xf32, #tpu.memory_space<vmem>>, vector<16x32xf32>
      %c0_62 = arith.constant 0 : index
      %c0_63 = arith.constant 0 : index
      %225 = vector.load %arg2[%c0_62, %c0_63] : memref<16x32xf32, #tpu.memory_space<vmem>>, vector<16x32xf32>
      %226 = arith.addf %224, %225 : vector<16x32xf32>
      %cst_64 = arith.constant 5.65685415 : f32
      %227 = vector.broadcast %cst_64 : f32 to vector<16x32xf32>
      %228 = arith.mulf %226, %227 : vector<16x32xf32>
      %c0_65 = arith.constant 0 : index
      %c0_66 = arith.constant 0 : index
      %229 = vector.load %arg11[%c0_65, %c0_66] : memref<16x32xf32, #tpu.memory_space<vmem>>, vector<16x32xf32>
      tpu.vector_store %arg11[%c0_65, %c0_66], %228 {strides = array<i32>} : memref<16x32xf32, #tpu.memory_space<vmem>>, vector<16x32xf32>,
    } else {
    }
    %c0 = arith.constant 0 : index
    %c0_1 = arith.constant 0 : index
    %3 = vector.load %arg11[%c0, %c0_1] : memref<16x32xf32, #tpu.memory_space<vmem>>, vector<16x32xf32>
    %c0_2 = arith.constant 0 : index
    %c0_3 = arith.constant 0 : index
    %c0_4 = arith.constant 0 : index
    %4 = vector.load %arg8[%c0_2, %c0_3, %c0_4] : memref<1x16x32xf32, #tpu.memory_space<vmem>>, vector<1x16x32xf32>
    %5 = vector.shape_cast %4 : vector<1x16x32xf32> to vector<16x32xf32>
    %c0_5 = arith.constant 0 : index
    %c0_6 = arith.constant 0 : index
    %c0_7 = arith.constant 0 : index
    %6 = vector.load %arg9[%c0_5, %c0_6, %c0_7] : memref<1x1x64xf32, #tpu.memory_space<vmem>>, vector<1x1x64xf32>
    %7 = vector.shape_cast %6 : vector<1x1x64xf32> to vector<1x64xf32>
    %8 = arith.truncf %3 : vector<16x32xf32> to vector<16x32xbf16>
    %c0_8 = arith.constant 0 : index
    %c0_9 = arith.constant 0 : index
    %c0_10 = arith.constant 0 : index
    %9 = vector.load %arg4[%c0_8, %c0_9, %c0_10] : memref<1x32x96xbf16, #tpu.memory_space<vmem>>, vector<1x32x96xbf16>
    %10 = vector.shape_cast %9 : vector<1x32x96xbf16> to vector<32x96xbf16>
    %cst = arith.constant dense<0.000000e+00> : vector<16x96xf32>
    %11 = tpu.matmul %8, %10, %cst {dimension_numbers = #tpu.dot_dimension_numbers<[1], [0], [0], [1], [0, 0, 1, 1], [], []>} : vector<16x32xbf16>, vector<32x96xbf16>, vector<16x96xf32> -> vector<16x96xf32>
    %12 = vector.extract_strided_slice %11 {offsets = [0, 0], sizes = [16, 32], strides = [1, 1]} : vector<16x96xf32> to vector<16x32xf32>
    %13 = vector.extract_strided_slice %5 {offsets = [0, 0], sizes = [1, 32], strides = [1, 1]} : vector<16x32xf32> to vector<1x32xf32>
    %14 = vector.broadcast %13 : vector<1x32xf32> to vector<16x32xf32>
    %15 = arith.addf %12, %14 : vector<16x32xf32>
    %16 = vector.extract_strided_slice %11 {offsets = [0, 32], sizes = [16, 32], strides = [1, 1]} : vector<16x96xf32> to vector<16x32xf32>
    %17 = vector.extract_strided_slice %5 {offsets = [1, 0], sizes = [1, 32], strides = [1, 1]} : vector<16x32xf32> to vector<1x32xf32>
    %18 = vector.broadcast %17 : vector<1x32xf32> to vector<16x32xf32>
    %19 = arith.addf %16, %18 : vector<16x32xf32>
    %20 = vector.extract_strided_slice %11 {offsets = [0, 64], sizes = [16, 32], strides = [1, 1]} : vector<16x96xf32> to vector<16x32xf32>
    %21 = vector.extract_strided_slice %5 {offsets = [2, 0], sizes = [1, 32], strides = [1, 1]} : vector<16x32xf32> to vector<1x32xf32>
    %22 = vector.broadcast %21 : vector<1x32xf32> to vector<16x32xf32>
    %23 = arith.addf %20, %22 : vector<16x32xf32>
    %c0_11 = arith.constant 0 : index
    %c0_12 = arith.constant 0 : index
    %c0_13 = arith.constant 0 : index
    %c0_14 = arith.constant 0 : index
    %24 = vector.load %arg5[%c0_11, %c0_12, %c0_13, %c0_14] : memref<1x4x8x32xbf16, #tpu.memory_space<vmem>>, vector<1x4x8x32xbf16>
    %25 = vector.shape_cast %24 : vector<1x4x8x32xbf16> to vector<4x8x32xbf16>
    %c0_15 = arith.constant 0 : index
    %c0_16 = arith.constant 0 : index
    %26 = vector.load %arg3[%c0_15, %c0_16] : memref<8x8xf32, #tpu.memory_space<vmem>>, vector<8x8xf32>
    %cst_17 = arith.constant 0.000000e+00 : f32
    %27 = vector.broadcast %cst_17 : f32 to vector<16x32xf32>
    %28 = vector.extract_strided_slice %15 {offsets = [0, 0], sizes = [16, 8], strides = [1, 1]} : vector<16x32xf32> to vector<16x8xf32>
    %29 = vector.shape_cast %28 : vector<16x8xf32> to vector<2x8x8xf32>
    %30 = arith.truncf %29 : vector<2x8x8xf32> to vector<2x8x8xbf16>
    %31 = vector.extract_strided_slice %19 {offsets = [0, 0], sizes = [16, 8], strides = [1, 1]} : vector<16x32xf32> to vector<16x8xf32>
    %32 = vector.shape_cast %31 : vector<16x8xf32> to vector<2x8x8xf32>
    %33 = arith.truncf %32 : vector<2x8x8xf32> to vector<2x8x8xbf16>
    %34 = vector.extract_strided_slice %23 {offsets = [0, 0], sizes = [16, 8], strides = [1, 1]} : vector<16x32xf32> to vector<16x8xf32>
    %35 = vector.shape_cast %34 : vector<16x8xf32> to vector<2x8x8xf32>
    %36 = arith.truncf %35 : vector<2x8x8xf32> to vector<2x8x8xbf16>
    "tpu.trace_start"() <{level = 10 : i32, message = "bqd,bkd->bqk"}> : () -> ()
    %cst_18 = arith.constant dense<0.000000e+00> : vector<2x8x8xf32>
    %37 = tpu.matmul %30, %33, %cst_18 {dimension_numbers = #tpu.dot_dimension_numbers<[2], [2], [1], [1], [0, 0, 0, 1, 1, 1], [0], [0]>} : vector<2x8x8xbf16>, vector<2x8x8xbf16>, vector<2x8x8xf32> -> vector<2x8x8xf32>
    "tpu.trace_stop"() : () -> ()
    %38 = vector.shape_cast %26 : vector<8x8xf32> to vector<1x8x8xf32>
    %39 = vector.broadcast %38 : vector<1x8x8xf32> to vector<2x8x8xf32>
    %40 = arith.addf %37, %39 : vector<2x8x8xf32>
    %cst_19 = arith.constant dense<0xFF800000> : vector<2x8xf32>
    %41 = vector.multi_reduction <maximumf>, %40, %cst_19 [2] : vector<2x8x8xf32> to vector<2x8xf32>
    %42 = vector.shape_cast %41 : vector<2x8xf32> to vector<2x8x1xf32>
    %43 = vector.broadcast %42 : vector<2x8x1xf32> to vector<2x8x8xf32>
    %44 = arith.subf %40, %43 : vector<2x8x8xf32>
    %45 = math.exp %44 : vector<2x8x8xf32>
    %cst_20 = arith.constant dense<0.000000e+00> : vector<2x8xf32>
    %46 = vector.multi_reduction <add>, %45, %cst_20 [2] : vector<2x8x8xf32> to vector<2x8xf32>
    %47 = vector.shape_cast %46 : vector<2x8xf32> to vector<2x8x1xf32>
    %48 = tpu.reciprocal %47 {approx = true} : vector<2x8x1xf32> -> vector<2x8x1xf32>
    %49 = vector.broadcast %48 : vector<2x8x1xf32> to vector<2x8x8xf32>
    %50 = arith.mulf %45, %49 : vector<2x8x8xf32>
    %51 = arith.truncf %50 : vector<2x8x8xf32> to vector<2x8x8xbf16>
    "tpu.trace_start"() <{level = 10 : i32, message = "bqk,bkd->bqd"}> : () -> ()
    %cst_21 = arith.constant dense<0.000000e+00> : vector<2x8x8xf32>
    %52 = tpu.matmul %51, %36, %cst_21 {dimension_numbers = #tpu.dot_dimension_numbers<[2], [1], [1], [2], [0, 0, 0, 1, 1, 2], [0], [0]>} : vector<2x8x8xbf16>, vector<2x8x8xbf16>, vector<2x8x8xf32> -> vector<2x8x8xf32>
    "tpu.trace_stop"() : () -> ()
    %53 = vector.shape_cast %52 : vector<2x8x8xf32> to vector<16x8xf32>
    %54 = arith.truncf %53 : vector<16x8xf32> to vector<16x8xbf16>
    %55 = vector.extract_strided_slice %25 {offsets = [0, 0, 0], sizes = [1, 8, 32], strides = [1, 1, 1]} : vector<4x8x32xbf16> to vector<1x8x32xbf16>
    %56 = vector.shape_cast %55 : vector<1x8x32xbf16> to vector<8x32xbf16>
    %cst_22 = arith.constant dense<0.000000e+00> : vector<16x32xf32>
    %57 = tpu.matmul %54, %56, %cst_22 {dimension_numbers = #tpu.dot_dimension_numbers<[1], [0], [0], [1], [0, 0, 1, 1], [], []>} : vector<16x8xbf16>, vector<8x32xbf16>, vector<16x32xf32> -> vector<16x32xf32>
    %58 = arith.addf %27, %57 : vector<16x32xf32>
    %59 = vector.extract_strided_slice %15 {offsets = [0, 8], sizes = [16, 8], strides = [1, 1]} : vector<16x32xf32> to vector<16x8xf32>
    %60 = vector.shape_cast %59 : vector<16x8xf32> to vector<2x8x8xf32>
    %61 = arith.truncf %60 : vector<2x8x8xf32> to vector<2x8x8xbf16>
    %62 = vector.extract_strided_slice %19 {offsets = [0, 8], sizes = [16, 8], strides = [1, 1]} : vector<16x32xf32> to vector<16x8xf32>
    %63 = vector.shape_cast %62 : vector<16x8xf32> to vector<2x8x8xf32>
    %64 = arith.truncf %63 : vector<2x8x8xf32> to vector<2x8x8xbf16>
    %65 = vector.extract_strided_slice %23 {offsets = [0, 8], sizes = [16, 8], strides = [1, 1]} : vector<16x32xf32> to vector<16x8xf32>
    %66 = vector.shape_cast %65 : vector<16x8xf32> to vector<2x8x8xf32>
    %67 = arith.truncf %66 : vector<2x8x8xf32> to vector<2x8x8xbf16>
    "tpu.trace_start"() <{level = 10 : i32, message = "bqd,bkd->bqk"}> : () -> ()
    %cst_23 = arith.constant dense<0.000000e+00> : vector<2x8x8xf32>
    %68 = tpu.matmul %61, %64, %cst_23 {dimension_numbers = #tpu.dot_dimension_numbers<[2], [2], [1], [1], [0, 0, 0, 1, 1, 1], [0], [0]>} : vector<2x8x8xbf16>, vector<2x8x8xbf16>, vector<2x8x8xf32> -> vector<2x8x8xf32>
    "tpu.trace_stop"() : () -> ()
    %69 = vector.shape_cast %26 : vector<8x8xf32> to vector<1x8x8xf32>
    %70 = vector.broadcast %69 : vector<1x8x8xf32> to vector<2x8x8xf32>
    %71 = arith.addf %68, %70 : vector<2x8x8xf32>
    %cst_24 = arith.constant dense<0xFF800000> : vector<2x8xf32>
    %72 = vector.multi_reduction <maximumf>, %71, %cst_24 [2] : vector<2x8x8xf32> to vector<2x8xf32>
    %73 = vector.shape_cast %72 : vector<2x8xf32> to vector<2x8x1xf32>
    %74 = vector.broadcast %73 : vector<2x8x1xf32> to vector<2x8x8xf32>
    %75 = arith.subf %71, %74 : vector<2x8x8xf32>
    %76 = math.exp %75 : vector<2x8x8xf32>
    %cst_25 = arith.constant dense<0.000000e+00> : vector<2x8xf32>
    %77 = vector.multi_reduction <add>, %76, %cst_25 [2] : vector<2x8x8xf32> to vector<2x8xf32>
    %78 = vector.shape_cast %77 : vector<2x8xf32> to vector<2x8x1xf32>
    %79 = tpu.reciprocal %78 {approx = true} : vector<2x8x1xf32> -> vector<2x8x1xf32>
    %80 = vector.broadcast %79 : vector<2x8x1xf32> to vector<2x8x8xf32>
    %81 = arith.mulf %76, %80 : vector<2x8x8xf32>
    %82 = arith.truncf %81 : vector<2x8x8xf32> to vector<2x8x8xbf16>
    "tpu.trace_start"() <{level = 10 : i32, message = "bqk,bkd->bqd"}> : () -> ()
    %cst_26 = arith.constant dense<0.000000e+00> : vector<2x8x8xf32>
    %83 = tpu.matmul %82, %67, %cst_26 {dimension_numbers = #tpu.dot_dimension_numbers<[2], [1], [1], [2], [0, 0, 0, 1, 1, 2], [0], [0]>} : vector<2x8x8xbf16>, vector<2x8x8xbf16>, vector<2x8x8xf32> -> vector<2x8x8xf32>
    "tpu.trace_stop"() : () -> ()
    %84 = vector.shape_cast %83 : vector<2x8x8xf32> to vector<16x8xf32>
    %85 = arith.truncf %84 : vector<16x8xf32> to vector<16x8xbf16>
    %86 = vector.extract_strided_slice %25 {offsets = [1, 0, 0], sizes = [1, 8, 32], strides = [1, 1, 1]} : vector<4x8x32xbf16> to vector<1x8x32xbf16>
    %87 = vector.shape_cast %86 : vector<1x8x32xbf16> to vector<8x32xbf16>
    %cst_27 = arith.constant dense<0.000000e+00> : vector<16x32xf32>
    %88 = tpu.matmul %85, %87, %cst_27 {dimension_numbers = #tpu.dot_dimension_numbers<[1], [0], [0], [1], [0, 0, 1, 1], [], []>} : vector<16x8xbf16>, vector<8x32xbf16>, vector<16x32xf32> -> vector<16x32xf32>
    %89 = arith.addf %58, %88 : vector<16x32xf32>
    %90 = vector.extract_strided_slice %15 {offsets = [0, 16], sizes = [16, 8], strides = [1, 1]} : vector<16x32xf32> to vector<16x8xf32>
    %91 = vector.shape_cast %90 : vector<16x8xf32> to vector<2x8x8xf32>
    %92 = arith.truncf %91 : vector<2x8x8xf32> to vector<2x8x8xbf16>
    %93 = vector.extract_strided_slice %19 {offsets = [0, 16], sizes = [16, 8], strides = [1, 1]} : vector<16x32xf32> to vector<16x8xf32>
    %94 = vector.shape_cast %93 : vector<16x8xf32> to vector<2x8x8xf32>
    %95 = arith.truncf %94 : vector<2x8x8xf32> to vector<2x8x8xbf16>
    %96 = vector.extract_strided_slice %23 {offsets = [0, 16], sizes = [16, 8], strides = [1, 1]} : vector<16x32xf32> to vector<16x8xf32>
    %97 = vector.shape_cast %96 : vector<16x8xf32> to vector<2x8x8xf32>
    %98 = arith.truncf %97 : vector<2x8x8xf32> to vector<2x8x8xbf16>
    "tpu.trace_start"() <{level = 10 : i32, message = "bqd,bkd->bqk"}> : () -> ()
    %cst_28 = arith.constant dense<0.000000e+00> : vector<2x8x8xf32>
    %99 = tpu.matmul %92, %95, %cst_28 {dimension_numbers = #tpu.dot_dimension_numbers<[2], [2], [1], [1], [0, 0, 0, 1, 1, 1], [0], [0]>} : vector<2x8x8xbf16>, vector<2x8x8xbf16>, vector<2x8x8xf32> -> vector<2x8x8xf32>
    "tpu.trace_stop"() : () -> ()
    %100 = vector.shape_cast %26 : vector<8x8xf32> to vector<1x8x8xf32>
    %101 = vector.broadcast %100 : vector<1x8x8xf32> to vector<2x8x8xf32>
    %102 = arith.addf %99, %101 : vector<2x8x8xf32>
    %cst_29 = arith.constant dense<0xFF800000> : vector<2x8xf32>
    %103 = vector.multi_reduction <maximumf>, %102, %cst_29 [2] : vector<2x8x8xf32> to vector<2x8xf32>
    %104 = vector.shape_cast %103 : vector<2x8xf32> to vector<2x8x1xf32>
    %105 = vector.broadcast %104 : vector<2x8x1xf32> to vector<2x8x8xf32>
    %106 = arith.subf %102, %105 : vector<2x8x8xf32>
    %107 = math.exp %106 : vector<2x8x8xf32>
    %cst_30 = arith.constant dense<0.000000e+00> : vector<2x8xf32>
    %108 = vector.multi_reduction <add>, %107, %cst_30 [2] : vector<2x8x8xf32> to vector<2x8xf32>
    %109 = vector.shape_cast %108 : vector<2x8xf32> to vector<2x8x1xf32>
    %110 = tpu.reciprocal %109 {approx = true} : vector<2x8x1xf32> -> vector<2x8x1xf32>
    %111 = vector.broadcast %110 : vector<2x8x1xf32> to vector<2x8x8xf32>
    %112 = arith.mulf %107, %111 : vector<2x8x8xf32>
    %113 = arith.truncf %112 : vector<2x8x8xf32> to vector<2x8x8xbf16>
    "tpu.trace_start"() <{level = 10 : i32, message = "bqk,bkd->bqd"}> : () -> ()
    %cst_31 = arith.constant dense<0.000000e+00> : vector<2x8x8xf32>
    %114 = tpu.matmul %113, %98, %cst_31 {dimension_numbers = #tpu.dot_dimension_numbers<[2], [1], [1], [2], [0, 0, 0, 1, 1, 2], [0], [0]>} : vector<2x8x8xbf16>, vector<2x8x8xbf16>, vector<2x8x8xf32> -> vector<2x8x8xf32>
    "tpu.trace_stop"() : () -> ()
    %115 = vector.shape_cast %114 : vector<2x8x8xf32> to vector<16x8xf32>
    %116 = arith.truncf %115 : vector<16x8xf32> to vector<16x8xbf16>
    %117 = vector.extract_strided_slice %25 {offsets = [2, 0, 0], sizes = [1, 8, 32], strides = [1, 1, 1]} : vector<4x8x32xbf16> to vector<1x8x32xbf16>
    %118 = vector.shape_cast %117 : vector<1x8x32xbf16> to vector<8x32xbf16>
    %cst_32 = arith.constant dense<0.000000e+00> : vector<16x32xf32>
    %119 = tpu.matmul %116, %118, %cst_32 {dimension_numbers = #tpu.dot_dimension_numbers<[1], [0], [0], [1], [0, 0, 1, 1], [], []>} : vector<16x8xbf16>, vector<8x32xbf16>, vector<16x32xf32> -> vector<16x32xf32>
    %120 = arith.addf %89, %119 : vector<16x32xf32>
    %121 = vector.extract_strided_slice %15 {offsets = [0, 24], sizes = [16, 8], strides = [1, 1]} : vector<16x32xf32> to vector<16x8xf32>
    %122 = vector.shape_cast %121 : vector<16x8xf32> to vector<2x8x8xf32>
    %123 = arith.truncf %122 : vector<2x8x8xf32> to vector<2x8x8xbf16>
    %124 = vector.extract_strided_slice %19 {offsets = [0, 24], sizes = [16, 8], strides = [1, 1]} : vector<16x32xf32> to vector<16x8xf32>
    %125 = vector.shape_cast %124 : vector<16x8xf32> to vector<2x8x8xf32>
    %126 = arith.truncf %125 : vector<2x8x8xf32> to vector<2x8x8xbf16>
    %127 = vector.extract_strided_slice %23 {offsets = [0, 24], sizes = [16, 8], strides = [1, 1]} : vector<16x32xf32> to vector<16x8xf32>
    %128 = vector.shape_cast %127 : vector<16x8xf32> to vector<2x8x8xf32>
    %129 = arith.truncf %128 : vector<2x8x8xf32> to vector<2x8x8xbf16>
    "tpu.trace_start"() <{level = 10 : i32, message = "bqd,bkd->bqk"}> : () -> ()
    %cst_33 = arith.constant dense<0.000000e+00> : vector<2x8x8xf32>
    %130 = tpu.matmul %123, %126, %cst_33 {dimension_numbers = #tpu.dot_dimension_numbers<[2], [2], [1], [1], [0, 0, 0, 1, 1, 1], [0], [0]>} : vector<2x8x8xbf16>, vector<2x8x8xbf16>, vector<2x8x8xf32> -> vector<2x8x8xf32>
    "tpu.trace_stop"() : () -> ()
    %131 = vector.shape_cast %26 : vector<8x8xf32> to vector<1x8x8xf32>
    %132 = vector.broadcast %131 : vector<1x8x8xf32> to vector<2x8x8xf32>
    %133 = arith.addf %130, %132 : vector<2x8x8xf32>
    %cst_34 = arith.constant dense<0xFF800000> : vector<2x8xf32>
    %134 = vector.multi_reduction <maximumf>, %133, %cst_34 [2] : vector<2x8x8xf32> to vector<2x8xf32>
    %135 = vector.shape_cast %134 : vector<2x8xf32> to vector<2x8x1xf32>
    %136 = vector.broadcast %135 : vector<2x8x1xf32> to vector<2x8x8xf32>
    %137 = arith.subf %133, %136 : vector<2x8x8xf32>
    %138 = math.exp %137 : vector<2x8x8xf32>
    %cst_35 = arith.constant dense<0.000000e+00> : vector<2x8xf32>
    %139 = vector.multi_reduction <add>, %138, %cst_35 [2] : vector<2x8x8xf32> to vector<2x8xf32>
    %140 = vector.shape_cast %139 : vector<2x8xf32> to vector<2x8x1xf32>
    %141 = tpu.reciprocal %140 {approx = true} : vector<2x8x1xf32> -> vector<2x8x1xf32>
    %142 = vector.broadcast %141 : vector<2x8x1xf32> to vector<2x8x8xf32>
    %143 = arith.mulf %138, %142 : vector<2x8x8xf32>
    %144 = arith.truncf %143 : vector<2x8x8xf32> to vector<2x8x8xbf16>
    "tpu.trace_start"() <{level = 10 : i32, message = "bqk,bkd->bqd"}> : () -> ()
    %cst_36 = arith.constant dense<0.000000e+00> : vector<2x8x8xf32>
    %145 = tpu.matmul %144, %129, %cst_36 {dimension_numbers = #tpu.dot_dimension_numbers<[2], [1], [1], [2], [0, 0, 0, 1, 1, 2], [0], [0]>} : vector<2x8x8xbf16>, vector<2x8x8xbf16>, vector<2x8x8xf32> -> vector<2x8x8xf32>
    "tpu.trace_stop"() : () -> ()
    %146 = vector.shape_cast %145 : vector<2x8x8xf32> to vector<16x8xf32>
    %147 = arith.truncf %146 : vector<16x8xf32> to vector<16x8xbf16>
    %148 = vector.extract_strided_slice %25 {offsets = [3, 0, 0], sizes = [1, 8, 32], strides = [1, 1, 1]} : vector<4x8x32xbf16> to vector<1x8x32xbf16>
    %149 = vector.shape_cast %148 : vector<1x8x32xbf16> to vector<8x32xbf16>
    %cst_37 = arith.constant dense<0.000000e+00> : vector<16x32xf32>
    %150 = tpu.matmul %147, %149, %cst_37 {dimension_numbers = #tpu.dot_dimension_numbers<[1], [0], [0], [1], [0, 0, 1, 1], [], []>} : vector<16x8xbf16>, vector<8x32xbf16>, vector<16x32xf32> -> vector<16x32xf32>
    %151 = arith.addf %120, %150 : vector<16x32xf32>
    %152 = vector.extract_strided_slice %5 {offsets = [3, 0], sizes = [1, 32], strides = [1, 1]} : vector<16x32xf32> to vector<1x32xf32>
    %153 = vector.broadcast %152 : vector<1x32xf32> to vector<16x32xf32>
    %154 = arith.addf %151, %153 : vector<16x32xf32>
    %155 = arith.addf %3, %154 : vector<16x32xf32>
    %cst_38 = arith.constant dense<0.000000e+00> : vector<16xf32>
    %156 = vector.multi_reduction <add>, %155, %cst_38 [1] : vector<16x32xf32> to vector<16xf32>
    %157 = vector.shape_cast %156 : vector<16xf32> to vector<16x1xf32>
    %cst_39 = arith.constant 3.200000e+01 : f32
    %158 = vector.broadcast %cst_39 : f32 to vector<16x1xf32>
    %159 = arith.divf %157, %158 : vector<16x1xf32>
    %160 = vector.broadcast %159 : vector<16x1xf32> to vector<16x32xf32>
    %161 = arith.subf %155, %160 : vector<16x32xf32>
    %162 = arith.mulf %161, %161 : vector<16x32xf32>
    %cst_40 = arith.constant dense<0.000000e+00> : vector<16xf32>
    %163 = vector.multi_reduction <add>, %162, %cst_40 [1] : vector<16x32xf32> to vector<16xf32>
    %164 = vector.shape_cast %163 : vector<16xf32> to vector<16x1xf32>
    %cst_41 = arith.constant 3.200000e+01 : f32
    %165 = vector.broadcast %cst_41 : f32 to vector<16x1xf32>
    %166 = arith.divf %164, %165 : vector<16x1xf32>
    %167 = vector.broadcast %159 : vector<16x1xf32> to vector<16x32xf32>
    %168 = arith.subf %155, %167 : vector<16x32xf32>
    %cst_42 = arith.constant 9.99999974E-6 : f32
    %169 = vector.broadcast %cst_42 : f32 to vector<16x1xf32>
    %170 = arith.addf %166, %169 : vector<16x1xf32>
    %171 = math.rsqrt %170 : vector<16x1xf32>
    %172 = vector.broadcast %171 : vector<16x1xf32> to vector<16x32xf32>
    %173 = arith.mulf %168, %172 : vector<16x32xf32>
    %174 = vector.extract_strided_slice %5 {offsets = [4, 0], sizes = [1, 32], strides = [1, 1]} : vector<16x32xf32> to vector<1x32xf32>
    %175 = vector.broadcast %174 : vector<1x32xf32> to vector<16x32xf32>
    %176 = arith.mulf %173, %175 : vector<16x32xf32>
    %177 = vector.extract_strided_slice %5 {offsets = [5, 0], sizes = [1, 32], strides = [1, 1]} : vector<16x32xf32> to vector<1x32xf32>
    %178 = vector.broadcast %177 : vector<1x32xf32> to vector<16x32xf32>
    %179 = arith.addf %176, %178 : vector<16x32xf32>
    %180 = arith.truncf %179 : vector<16x32xf32> to vector<16x32xbf16>
    %c0_43 = arith.constant 0 : index
    %c0_44 = arith.constant 0 : index
    %c0_45 = arith.constant 0 : index
    %181 = vector.load %arg6[%c0_43, %c0_44, %c0_45] : memref<1x32x64xbf16, #tpu.memory_space<vmem>>, vector<1x32x64xbf16>
    %182 = vector.shape_cast %181 : vector<1x32x64xbf16> to vector<32x64xbf16>
    %cst_46 = arith.constant dense<0.000000e+00> : vector<16x64xf32>
    %183 = tpu.matmul %180, %182, %cst_46 {dimension_numbers = #tpu.dot_dimension_numbers<[1], [0], [0], [1], [0, 0, 1, 1], [], []>} : vector<16x32xbf16>, vector<32x64xbf16>, vector<16x64xf32> -> vector<16x64xf32>
    %184 = vector.broadcast %7 : vector<1x64xf32> to vector<16x64xf32>
    %185 = arith.addf %183, %184 : vector<16x64xf32>
    %cst_47 = arith.constant 0.000000e+00 : f32
    %186 = vector.broadcast %cst_47 : f32 to vector<16x64xf32>
    %187 = arith.maximumf %185, %186 : vector<16x64xf32>
    %188 = arith.truncf %187 : vector<16x64xf32> to vector<16x64xbf16>
    %c0_48 = arith.constant 0 : index
    %c0_49 = arith.constant 0 : index
    %c0_50 = arith.constant 0 : index
    %189 = vector.load %arg7[%c0_48, %c0_49, %c0_50] : memref<1x64x32xbf16, #tpu.memory_space<vmem>>, vector<1x64x32xbf16>
    %190 = vector.shape_cast %189 : vector<1x64x32xbf16> to vector<64x32xbf16>
    %cst_51 = arith.constant dense<0.000000e+00> : vector<16x32xf32>
    %191 = tpu.matmul %188, %190, %cst_51 {dimension_numbers = #tpu.dot_dimension_numbers<[1], [0], [0], [1], [0, 0, 1, 1], [], []>} : vector<16x64xbf16>, vector<64x32xbf16>, vector<16x32xf32> -> vector<16x32xf32>
    %192 = vector.extract_strided_slice %5 {offsets = [8, 0], sizes = [1, 32], strides = [1, 1]} : vector<16x32xf32> to vector<1x32xf32>
    %193 = vector.broadcast %192 : vector<1x32xf32> to vector<16x32xf32>
    %194 = arith.addf %191, %193 : vector<16x32xf32>
    %195 = arith.addf %179, %194 : vector<16x32xf32>
    %cst_52 = arith.constant dense<0.000000e+00> : vector<16xf32>
    %196 = vector.multi_reduction <add>, %195, %cst_52 [1] : vector<16x32xf32> to vector<16xf32>
    %197 = vector.shape_cast %196 : vector<16xf32> to vector<16x1xf32>
    %cst_53 = arith.constant 3.200000e+01 : f32
    %198 = vector.broadcast %cst_53 : f32 to vector<16x1xf32>
    %199 = arith.divf %197, %198 : vector<16x1xf32>
    %200 = vector.broadcast %199 : vector<16x1xf32> to vector<16x32xf32>
    %201 = arith.subf %195, %200 : vector<16x32xf32>
    %202 = arith.mulf %201, %201 : vector<16x32xf32>
    %cst_54 = arith.constant dense<0.000000e+00> : vector<16xf32>
    %203 = vector.multi_reduction <add>, %202, %cst_54 [1] : vector<16x32xf32> to vector<16xf32>
    %204 = vector.shape_cast %203 : vector<16xf32> to vector<16x1xf32>
    %cst_55 = arith.constant 3.200000e+01 : f32
    %205 = vector.broadcast %cst_55 : f32 to vector<16x1xf32>
    %206 = arith.divf %204, %205 : vector<16x1xf32>
    %207 = vector.broadcast %199 : vector<16x1xf32> to vector<16x32xf32>
    %208 = arith.subf %195, %207 : vector<16x32xf32>
    %cst_56 = arith.constant 9.99999974E-6 : f32
    %209 = vector.broadcast %cst_56 : f32 to vector<16x1xf32>
    %210 = arith.addf %206, %209 : vector<16x1xf32>
    %211 = math.rsqrt %210 : vector<16x1xf32>
    %212 = vector.broadcast %211 : vector<16x1xf32> to vector<16x32xf32>
    %213 = arith.mulf %208, %212 : vector<16x32xf32>
    %214 = vector.extract_strided_slice %5 {offsets = [6, 0], sizes = [1, 32], strides = [1, 1]} : vector<16x32xf32> to vector<1x32xf32>
    %215 = vector.broadcast %214 : vector<1x32xf32> to vector<16x32xf32>
    %216 = arith.mulf %213, %215 : vector<16x32xf32>
    %217 = vector.extract_strided_slice %5 {offsets = [7, 0], sizes = [1, 32], strides = [1, 1]} : vector<16x32xf32> to vector<1x32xf32>
    %218 = vector.broadcast %217 : vector<1x32xf32> to vector<16x32xf32>
    %219 = arith.addf %216, %218 : vector<16x32xf32>
    %c0_57 = arith.constant 0 : index
    %c0_58 = arith.constant 0 : index
    %220 = vector.load %arg11[%c0_57, %c0_58] : memref<16x32xf32, #tpu.memory_space<vmem>>, vector<16x32xf32>
    tpu.vector_store %arg11[%c0_57, %c0_58], %219 {strides = array<i32>} : memref<16x32xf32, #tpu.memory_space<vmem>>, vector<16x32xf32>,
    %c1_i32 = arith.constant 1 : i32
    %221 = arith.cmpi eq, %arg0, %c1_i32 : i32
    %222 = arith.extui %221 : i1 to i32
    %c0_i32_59 = arith.constant 0 : i32
    %223 = arith.cmpi ne, %222, %c0_i32_59 : i32
    scf.if %223 {
      %c0_60 = arith.constant 0 : index
      %c0_61 = arith.constant 0 : index
      %224 = vector.load %arg10[%c0_60, %c0_61] : memref<16x32xf32, #tpu.memory_space<vmem>>, vector<16x32xf32>
      tpu.vector_store %arg10[%c0_60, %c0_61], %219 {strides = array<i32>} : memref<16x32xf32, #tpu.memory_space<vmem>>, vector<16x32xf32>,
    } else {
    }
    return
  }
  func.func @transform_0(%arg0: i32) -> (i32, i32) {
    %c0_i32 = arith.constant 0 : i32
    %c0_i32_0 = arith.constant 0 : i32
    %c0_i32_1 = arith.constant 0 : i32
    return %c0_i32, %c0_i32_0 : i32, i32
  }
  func.func @transform_1(%arg0: i32) -> (i32, i32) {
    %c0_i32 = arith.constant 0 : i32
    %c0_i32_0 = arith.constant 0 : i32
    %c0_i32_1 = arith.constant 0 : i32
    return %c0_i32, %c0_i32_0 : i32, i32
  }
  func.func @transform_2(%arg0: i32) -> (i32, i32) {
    %c0_i32 = arith.constant 0 : i32
    %c0_i32_0 = arith.constant 0 : i32
    %c0_i32_1 = arith.constant 0 : i32
    return %c0_i32, %c0_i32_0 : i32, i32
  }
  func.func @transform_3(%arg0: i32) -> (i32, i32, i32) {
    %c0_i32 = arith.constant 0 : i32
    %c0_i32_0 = arith.constant 0 : i32
    %c0_i32_1 = arith.constant 0 : i32
    return %arg0, %c0_i32, %c0_i32_0 : i32, i32, i32
  }
  func.func @transform_4(%arg0: i32) -> (i32, i32, i32, i32) {
    %c0_i32 = arith.constant 0 : i32
    %c0_i32_0 = arith.constant 0 : i32
    %c0_i32_1 = arith.constant 0 : i32
    %c0_i32_2 = arith.constant 0 : i32
    return %arg0, %c0_i32, %c0_i32_0, %c0_i32_1 : i32, i32, i32, i32
  }
  func.func @transform_5(%arg0: i32) -> (i32, i32, i32) {
    %c0_i32 = arith.constant 0 : i32
    %c0_i32_0 = arith.constant 0 : i32
    %c0_i32_1 = arith.constant 0 : i32
    return %arg0, %c0_i32, %c0_i32_0 : i32, i32, i32
  }
  func.func @transform_6(%arg0: i32) -> (i32, i32, i32) {
    %c0_i32 = arith.constant 0 : i32
    %c0_i32_0 = arith.constant 0 : i32
    %c0_i32_1 = arith.constant 0 : i32
    return %arg0, %c0_i32, %c0_i32_0 : i32, i32, i32
  }
  func.func @transform_7(%arg0: i32) -> (i32, i32, i32) {
    %c0_i32 = arith.constant 0 : i32
    %c0_i32_0 = arith.constant 0 : i32
    %c0_i32_1 = arith.constant 0 : i32
    return %arg0, %c0_i32, %c0_i32_0 : i32, i32, i32
  }
  func.func @transform_8(%arg0: i32) -> (i32, i32, i32) {
    %c0_i32 = arith.constant 0 : i32
    %c0_i32_0 = arith.constant 0 : i32
    %c0_i32_1 = arith.constant 0 : i32
    return %arg0, %c0_i32, %c0_i32_0 : i32, i32, i32
  }
  func.func @transform_9(%arg0: i32) -> (i32, i32) {
    %c0_i32 = arith.constant 0 : i32
    %c0_i32_0 = arith.constant 0 : i32
    %c0_i32_1 = arith.constant 0 : i32
    return %c0_i32, %c0_i32_0 : i32, i32
  }
}

</mosaic_0001>

<bundles_post_ra>
// kernel: tpu_custom_call.1
= control target key start
LH: loop header
LB: loop body
LE: loop exit
PB: predicated region body
PF: predicated region fallthrough
CT: control target
= control target key end

     0   :  { %s3265_s0 = inlined_call_operand.hbm [shape: f32[16,32], index: 0, kind: input, shape index: {}]   ;;  %s3266_s1 = inlined_call_operand.hbm [shape: f32[16,32], index: 1, kind: input, shape index: {}]   ;;  %s3267_s2 = inlined_call_operand.hbm [shape: f32[8,8], index: 2, kind: input, shape index: {}]   ;;  %s3268_s3 = inlined_call_operand.vmem [shape: bf16[2,32,96], index: 3, kind: input, shape index: {}]   ;;  %s3269_s4 = inlined_call_operand.vmem [shape: bf16[2,4,8,32], index: 4, kind: input, shape index: {}]   ;;  %s3270_s5 = inlined_call_operand.vmem [shape: bf16[2,32,64], index: 5, kind: input, shape index: {}]   ;;  %s3271_s6 = inlined_call_operand.vmem [shape: bf16[2,64,32], index: 6, kind: input, shape index: {}]   ;;  %s3272_s7 = inlined_call_operand.hbm [shape: f32[2,16,32], index: 7, kind: input, shape index: {}]   ;;  %s3273_s8 = inlined_call_operand.vmem [shape: f32[2,1,64], index: 8, kind: input, shape index: {}]   ;;  %s3274_s9 = inlined_call_operand.hbm [shape: f32[16,32], index: 9, kind: output, shape index: {}]  }
   0x1   :  { %3279 = sst [smem:[#allocation16_spill]] %s3265_s0 }
   0x2   :  { %3280 = sst [smem:[#allocation17_spill]] %s3274_s9 }
   0x3   :  { %14 = vsyncpa [#allocation4], 0 }
   0x4   :  { %15 = vsyncpa [#allocation7], 0 }
   0x5   :  { %16 = vsyncpa [#allocation10], 0 }
   0x6   :  { %18 = vsyncpa [#allocation10 + $0x1], 0 }
   0x7   :  { %19 = vsyncpa [#allocation5], 0  ;;  %s2737_s30 = smov 0   ;;  %s2739_s10 = smov 0  }
   0x8   :  { %s2741_s11 = smov 0   ;;  %s2743_s12 = smov 0  }
   0x9 LB: > { %s2756_s13 = sadd.s32 4294967295, %s2662_s12   ;;  %p212_p0 = scmp.ne.s32.totalorder %s2654_s10, %s2650_s30  ;;  %s2662_s12 = sphi %s2743_s12, %s3298_s12   ;;  %s2658_s11 = sphi %s2741_s11, %s3297_s11   ;;  %s2654_s10 = sphi %s2739_s10, %s3296_s10   ;;  %s2650_s30 = sphi %s2737_s30, %s3295_s30  }
   0xa   : > { %p3275_p1 = scmp.eq.s32.totalorder %s2756_s13, 0  ;;  %p2069_p2 = scmp.ge.s32.totalorder %s2662_s12, 1 }
   0xb   : > { %p270_p3 = scmp.lt.s32.totalorder %s2662_s12, 3  ;;  %s2664_s16 = smov [#allocation6]  }
   0xc   : > { %p2765_p5 = por %p3275_p1, %p212_p0  ;;  %s295_s17 = sshll.u32 %s2664_s16, 4  ;;  %s2775_s17 = int_to_ptr.vmem [resolvable:$true] %s295_s17 }
   0xd   : > { %p2769_p6 = pnand %p2069_p2, %p270_p3  ;;  %s2665_s19 = smov [#allocation3]  }
   0xe   : > { %s3281_s14 = scalar_select %p2765_p5, 1, 0 }
   0xf   : > { %s3282_s15 = scalar_select %p2769_p6, 1, 0 }
  0x10   : > { %p2350_p7 = pneg %p2769_p6  ;;  %s282_s20 = sshll.u32 %s2665_s19, 4  ;;  %s2783_s20 = int_to_ptr.vmem [resolvable:$true] %s282_s20 }
  0x11   : > { %s2666_s21 = smov [#allocation8]   ;;  %s2476_s25 = scalar_lea.hbm %s3266_s1, 256 }
  0x12   : > { %p2779_p8 = pnand %p2350_p7, %p3275_p1  ;;  %s2785_s22 = sshll.u32 %s2666_s21, 4  ;;  %s310_s22 = int_to_ptr.vmem [resolvable:$true] %s2785_s22 }
  0x13   : > { %p2477_p9 = scmp.ne.s32.totalorder %s3266_s1, %s2476_s25  ;;  %p2483_p13 = scmp.lt.u32.totalorder %s2476_s25, %s3266_s1 }
  0x14   : > { %p2795_p10 = pneg %p2779_p8 }
  0x16   : > { %p2479_p11 = pnand %p2795_p10, %p2477_p9 }
  0x18   : > { %p2480_p12 = pneg %p2479_p11 }
  0x1a   : > { %p2485_p0 = pnand %p2483_p13, %p2480_p12 }
  0x1c   : > { %2488 = shalt.err (!%p2485_p0)
}
  0x1d   : > { %s2489_s16 = scalar_lea.vmem %s2775_s17, 256  ;;  %p2497_p4 = scmp.lt.s32.totalorder %s2775_s17, %s2775_s17 }
  0x1e   : > { %p2490_p2 = scmp.ne.s32.totalorder %s2775_s17, %s2489_s16  ;;  %p2498_p1 = scmp.lt.s32.totalorder %s2489_s16, %s2489_s16 }
  0x20   : > { %p2492_p3 = pnand %p2490_p2, %p2795_p10  ;;  %p2499_p9 = por %p2498_p1, %p2497_p4 }
  0x22   : > { %p2493_p7 = pneg %p2492_p3 }
  0x24   : > { %p2500_p11 = pnand %p2499_p9, %p2493_p7 }
  0x26   : > { %2503 = shalt.err (!%p2500_p11)
}
  0x27   : > { %s2667_s19 = smov 128   ;;  %s2668_s21 = smov 8  }
  0x28   : > { %2356 = dma.hbm_to_vmem [thread:$0]  (!%p2779_p8), %s3266_s1, 256, %s2775_s17, [#allocation7], %s2667_s19, %s2667_s19, %s2668_s21  }
  0x29   : > { %s3285_s0 = sld [smem:[#allocation16_spill]] }
  0x2f   : > { %s2504_s27 = scalar_lea.hbm %s3285_s0, 256 }
  0x30   : > { %p2505_p1 = scmp.ne.s32.totalorder %s3285_s0, %s2504_s27  ;;  %p2511_p13 = scmp.lt.u32.totalorder %s2504_s27, %s3285_s0 }
  0x32   : > { %p2507_p4 = pnand %p2505_p1, %p2795_p10 }
  0x34   : > { %p2508_p12 = pneg %p2507_p4 }
  0x36   : > { %p2513_p0 = pnand %p2511_p13, %p2508_p12 }
  0x38   : > { %2516 = shalt.err (!%p2513_p0)
}
  0x39   : > { %s2517_s17 = scalar_lea.vmem %s2783_s20, 256  ;;  %p2525_p9 = scmp.lt.s32.totalorder %s2783_s20, %s2783_s20 }
  0x3a   : > { %p2518_p2 = scmp.ne.s32.totalorder %s2783_s20, %s2517_s17  ;;  %p2526_p11 = scmp.lt.s32.totalorder %s2517_s17, %s2517_s17 }
  0x3c   : > { %p2520_p3 = pnand %p2518_p2, %p2795_p10  ;;  %p2527_p1 = por %p2526_p11, %p2525_p9 }
  0x3e   : > { %p2521_p7 = pneg %p2520_p3 }
  0x40   : > { %p2528_p4 = pnand %p2527_p1, %p2521_p7 }
  0x42   : > { %2531 = shalt.err (!%p2528_p4)
}
  0x43   : > { %2353 = dma.hbm_to_vmem [thread:$0]  (!%p2779_p8), %s3285_s0, 256, %s2783_s20, [#allocation4], %s2667_s19, %s2667_s19, %s2668_s21  }
  0x44   : > { %s2532_s26 = scalar_lea.hbm %s3267_s2, 128 }
  0x45   : > { %p2533_p12 = scmp.ne.s32.totalorder %s3267_s2, %s2532_s26  ;;  %p2539_p2 = scmp.lt.u32.totalorder %s2532_s26, %s3267_s2 }
  0x47   : > { %p2535_p13 = pnand %p2533_p12, %p2795_p10 }
  0x49   : > { %p2536_p0 = pneg %p2535_p13 }
  0x4b   : > { %p2541_p3 = pnand %p2539_p2, %p2536_p0 }
  0x4d   : > { %2544 = shalt.err (!%p2541_p3)
}
  0x4e   : > { %s2545_s17 = scalar_lea.vmem %s310_s22, 128  ;;  %p2553_p1 = scmp.lt.s32.totalorder %s310_s22, %s310_s22 }
  0x4f   : > { %p2546_p7 = scmp.ne.s32.totalorder %s310_s22, %s2545_s17  ;;  %p2554_p4 = scmp.lt.s32.totalorder %s2545_s17, %s2545_s17 }
  0x51   : > { %p2548_p9 = pnand %p2546_p7, %p2795_p10  ;;  %p2555_p5 = por %p2554_p4, %p2553_p1 }
  0x53   : > { %p2549_p11 = pneg %p2548_p9 }
  0x55   : > { %p2556_p6 = pnand %p2555_p5, %p2549_p11 }
  0x57   : > { %2559 = shalt.err (!%p2556_p6)
}
  0x58   : > { %2359 = dma.hbm_to_vmem [thread:$0]  (!%p2779_p8), %s3267_s2, 128, %s310_s22, [#allocation7]  }
  0x59   : > { %s2865_s28 = sadd.s32 1, %s2662_s12   ;;  %s199_s24 = sadd.s32 1, %s2658_s11 }
  0x5a   : > { %s196_s23 = ssub.s32 %s2662_s12, %s2865_s28  ;;  %p206_p6 = scmp.ne.s32.totalorder %s2658_s11, %s2654_s10 }
  0x5b   : > { %p197_p5 = scmp.eq.s32.totalorder %s196_s23, 0  ;;  %p207_p10 = scmp.eq.s32.totalorder %s2662_s12, 0 }
  0x5c   : > { %p2367_p12 = scmp.lt.s32.totalorder %s2662_s12, 2  ;;  %s352_s25 = sand.u32 1, %s2658_s11  }
  0x5d   : > { %s2875_s18 = scalar_select %p197_p5, %s2658_s11, %s199_s24  }
  0x5e   : > { %p208_p13 = por %p207_p10, %p206_p6  ;;  %s2074_s26 = sshll.u32 %s352_s25, 4 }
  0x5f   : > { %s2128_s27 = sshll.u32 %s2662_s12, 8  ;;  %s356_s22 = scalar_lea.vmem [#allocation9], %s2074_s26 }
  0x60   : > { %s2882_s16 = scalar_lea.hbm %s3272_s7, %s2128_s27  ;;  %s363_s17 = sshll.u32 %s356_s22, 4  ;;  %s2884_s17 = int_to_ptr.vmem [resolvable:$true] %s363_s17 }
  0x61   : > { %p2886_p8 = pnand %p2367_p12, %p208_p13  ;;  %s2890_s12 = scalar_lea.sflag [#allocation10], %s352_s25 }
  0x62   : > { %s2560_s9 = scalar_lea.hbm %s2882_s16, 256  ;;  %s2565_s26 = scalar_lea.hbm %s3272_s7, 512 }
  0x63   : > { %p2561_p0 = scmp.ne.s32.totalorder %s2882_s16, %s2560_s9  ;;  %p2562_p2 = pneg %p2886_p8 }
  0x64   : > { %p2566_p9 = scmp.lt.u32.totalorder %s2882_s16, %s3272_s7  ;;  %p2567_p11 = scmp.lt.u32.totalorder %s2565_s26, %s2560_s9 }
  0x65   : > { %p2563_p3 = pnand %p2562_p2, %p2561_p0  ;;  %p2569_p4 = scmp.lt.u32.totalorder %s2560_s9, %s2882_s16 }
  0x66   : > { %p2568_p1 = por %p2567_p11, %p2566_p9 }
  0x67   : > { %p2564_p7 = pneg %p2563_p3 }
  0x68   : > { %p2570_p5 = por %p2569_p4, %p2568_p1 }
  0x6a   : > { %p2571_p6 = pnand %p2570_p5, %p2564_p7 }
  0x6c   : > { %2574 = shalt.err (!%p2571_p6)
}
  0x6d   : > { %s2575_s25 = scalar_lea.vmem %s2884_s17, 256  ;;  %s2669_s30 = smov [#allocation9]  }
  0x6e   : > { %p2576_p10 = scmp.ne.s32.totalorder %s2884_s17, %s2575_s25  ;;  %s2580_s22 = sshll.u32 %s2669_s30, 4  ;;  %s2581_s22 = int_to_ptr.vmem [resolvable:$false] %s2580_s22 }
  0x6f   : > { %s2582_s23 = scalar_lea.vmem %s2581_s22, 512  ;;  %p2583_p0 = scmp.lt.s32.totalorder %s2884_s17, %s2581_s22 }
  0x70   : > { %p2578_p12 = pnand %p2576_p10, %p2562_p2  ;;  %p2584_p3 = scmp.lt.s32.totalorder %s2582_s23, %s2575_s25 }
  0x72   : > { %p2579_p13 = pneg %p2578_p12  ;;  %p2585_p9 = por %p2584_p3, %p2583_p0 }
  0x74   : > { %p2586_p11 = pnand %p2585_p9, %p2579_p13 }
  0x76   : > { %2589 = shalt.err (!%p2586_p11)
}
  0x77   : > { %2363 = dma.hbm_to_vmem [thread:$0]  (!%p2886_p8), %s2882_s16, 256, %s2884_s17, %s2890_s12, %s2667_s19, %s2667_s19, %s2668_s21  }
  0x78   : > { %p3287_p2 = scmp.ne.s32.totalorder %s3282_s15, 0 }
  0x79   : > { %p3288_p7 = scmp.eq.s32.totalorder (!%p3287_p2), %s2756_s13, 0 }
  0x7a   : > { %381 = sbr.rel (%p3287_p2) target bundleno = 4635 (0x121b), region = 56 }
  0x81   : > { %2633 = dma.done.wait (%p3288_p7), [#allocation4], 256   ;;  %p3289_p1 = pmov %p3288_p7 }
  0x83   : > { %2635 = vsyncadd (%p3289_p1), [#allocation4], 4294967040  ;;  %p3290_p4 = pmov %p3289_p1 }
  0x84   : > { %p3291_p5 = pmov %p3289_p1 }
  0x85   : > { %2637 = dma.done.wait (%p3290_p4), [#allocation7], 384  }
  0x86   : > { %2639 = vsyncadd (%p3291_p5), [#allocation7], 4294966912  ;;  %s395_s20 = sand.u32 1, %s2654_s10   ;;  %p3292_p8 = scmp.ne.s32.totalorder %s3281_s14, 0 }
  0x87   : > { %s2081_s9 = sshll.u32 %s395_s20, 4  ;;  %s396_s19 = scalar_lea.sflag [#allocation10], %s395_s20 }
  0x88   : > { %s2932_s21 = scalar_lea.vmem [#allocation9], %s2081_s9 }
  0x89   : > { %2641 = dma.done.wait (%p3292_p8), %s396_s19, 256  }
  0x8a   : > { %2643 = vsyncadd (%p3292_p8), %s396_s19, 4294967040  ;;  %p452_p6 = scmp.lt.s32.totalorder %s2756_s13, 1  ;;  %p3293_p10 = scmp.ne.s32.totalorder %s2756_s13, 0 }
  0x8b   : > { %v480_v0 = vld [vmem:[#allocation3] sm:$0xff] (!%p3293_p10)  ;;  %v482_v1 = vld [vmem:[#allocation6] sm:$0xff] (!%p3293_p10)  ;;  %v481_v2 = vld [vmem:[#allocation3 + $0x8] sm:$0xff] (!%p3293_p10)  ;;  %vm488_vm0 = vcmask (!%p3293_p10), 261120  }
  0x8c   : > { %s2940_s15 = scalar_select %p452_p6, %s2756_s13, 1 }
  0x8d   : > { %479 = sbr.rel (%p3293_p10) target bundleno = 148 (0x94), region = 76  ;;  %v484_v3 = vadd.f32 (!%p3293_p10), %v482_v1, %v480_v0  ;;  %v483_v4 = vld [vmem:[#allocation6 + $0x8] sm:$0xff] (!%p3293_p10) }
  0x8e   : > { %s2129_s16 = sshll.u32 %s2940_s15, 4  ;;  %s2132_s17 = sshll.u32 %s2940_s15, 5  ;;  %v485_v5 = vadd.f32 (!%p3293_p10), %v483_v4, %v481_v2 }
  0x8f   : > { %s456_s26 = scalar_lea.vmem %s3268_s3, %s2129_s16  ;;  %s2950_s25 = scalar_lea.vmem %s3269_s4, %s2129_s16  ;;  %v486_v6 = vmul.f32 (!%p3293_p10), 5.656854, %v484_v3 }
  0x90   : > { %s2955_s22 = scalar_lea.vmem %s3270_s5, %s2129_s16  ;;  %s2960_s9 = scalar_lea.vmem %s3271_s6, %s2132_s17  ;;  %v487_v7 = vmul.f32 (!%p3293_p10), 5.656854, %v485_v5 }
  0x91   : > { %s474_s12 = scalar_lea.vmem %s3273_s8, %s2940_s15  ;;  %489 = vst.msk [vmem:[#allocation2] sm:$0xff] (!%p3293_p10), %vm488_vm0, %v486_v6 }
  0x92   : > { %490 = vst.msk [vmem:[#allocation2 + $0x8] sm:$0xff] (!%p3293_p10), %vm488_vm0, %v487_v7 }
  0x94 PF: > { %v2427_v8 = vld [vmem:[%s456_s26] sm:$0xff]   ;;  %v558_v9 = vlaneseq  ;;  %v2670_v10 = vmov 0.0   ;;  %v2428_v11 = vld [vmem:[%s456_s26 + $0x8] sm:$0xff]   ;;  %vm2671_vm1 = vmmov 0   ;;  %vm513_vm2 = vcmask 261120   ;;  %s2672_s0 = smov 32  }
  0x95   : > { %2184 = vmatprep.subr.bf16.mxu1 %v2670_v10  ;;  %2198 = vmatprep.subr.bf16.mxu0 %v2670_v10  ;;  %v2977_v14 = vld [vmem:[%s2932_s21] sm:$0xff]  ;;  %s2673_s16 = smov 96   ;;  %vm598_vm3 = vcmask 64512   ;;  %v3018_v38 = vld [vmem:[#allocation8] sm:$0xff]  ;;  %s2674_s17 = smov 64   ;;  %vm724_vm4 = vcmask 1043456  }
  0x96   : > { %2185 = vmatpush3.bf16.msra.mxu1 %v2427_v8  ;;  %2188 = vmatprep.mubr.msk.bf16.mxu1 %vm2671_vm1, %v2670_v10  ;;  %v2979_v15 = vshrl.u32 %v558_v9, 7  ;;  %s2675_s24 = smov 88   ;;  %s2676_s26 = smov 120   ;;  %vm1828_vm5 = vcmask 523264  }
  0x97   : > { %2186 = vmatprep.subr.bf16.mxu1 %v2670_v10  ;;  %2200 = vmatprep.mubr.msk.bf16.mxu0 %vm2671_vm1, %v2670_v10  ;;  %s2677_s27 = smov 56   ;;  %s2678_s29 = smov 80  }
  0x98   : > { %v2972_v12 = vld [vmem:[#allocation2] sm:$0xff]  ;;  %v566_v16 = vsub.s32 1, %v2979_v15  ;;  %v560_v28 = vsub.s32 0, %v2979_v15  ;;  %v576_v51 = vsub.s32 2, %v2979_v15  ;;  %s2679_s14 = smov 112   ;;  %s2680_s30 = smov 48  }
  0x99   : > { %v2974_v13 = vld [vmem:[#allocation2 + $0x8] sm:$0xff]  ;;  %s2681_s23 = smov 72   ;;  %s2682_s20 = smov 104  }
  0x9a   : > { %v496_v17 = vpack.c.bf16 %v2974_v13, %v2972_v12  ;;  %2187 = vmatpush3.bf16.msra.mxu1 %v2428_v11  ;;  %v567_v18 = vrot.slane %v2977_v14, %v566_v16  ;;  %v561_v29 = vrot.slane %v2977_v14, %v560_v28  ;;  %v577_v52 = vrot.slane %v2977_v14, %v576_v51  ;;  %s2683_s19 = smov 40   ;;  %p2123_p12 = scmp.ne.s32.totalorder %s2756_s13, 1 }
  0x9b   : > { %2192 = vmatprep.subr.bf16.mxu1 %v2670_v10 }
  0x9c   : > { %569 = vrot.lane.b32.xlu0 %v567_v18, %s2672_s0 }
  0x9d   : > { %2189 = vmatmul.mubr.msk.bf16.vlgmr.msra.gmra.mrb[0].mxu1 %vm513_vm2, %v496_v17 }
  0x9e   : > { %2194 = vmatprep.mubr.msk.bf16.mxu1 %vm2671_vm1, %v2670_v10 }
 0x10e   : > { %v570_v19 = vpop.permute.xlu0 %569 }
 0x170   : > { %v551_v20 = vpop.f32.mrb[0].mxu1 }
 0x171   : > { %v572_v21 = vadd.f32 %v570_v19, %v551_v20  ;;  %v2190_v22 = vpop.f32.mrb[1].mxu1  ;;  %v562_v33 = vadd.f32 %v561_v29, %v551_v20 }
 0x172   : > { %v554_v23 = vpop.f32.mrb[2].mxu1 }
 0x173   : > { %v2992_v24 = vpack.c.bf16 %v572_v21, %v572_v21  ;;  %v573_v25 = vadd.f32 %v570_v19, %v554_v23  ;;  %v2191_v26 = vpop.f32.mrb[3].mxu1  ;;  %v563_v35 = vadd.f32 %v561_v29, %v554_v23  ;;  %v3006_v36 = vpack.c.bf16 %v562_v33, %v562_v33 }
 0x175   : > { %v2994_v27 = vpack.c.bf16 %v573_v25, %v573_v25  ;;  %596 = vrot.lane.b32.xlu0 %v2992_v24, %s2673_s16  ;;  %v3008_v37 = vpack.c.bf16 %v563_v35, %v563_v35 }
 0x177   : > { %646 = vrot.lane.b32.xlu1 %v2994_v27, %s2673_s16 }
 0x1e7   : > { %v597_v30 = vpop.permute.xlu0 %596 }
 0x1e8   : > { %v603_v31 = vsel %vm598_vm3, %v597_v30, 0 }
 0x1e9   : > { %2193 = vmatpush3.bf16.xpose.msra.mxu1 %v603_v31  ;;  %v647_v32 = vpop.permute.xlu1 %646 }
 0x1ea   : > { %v652_v34 = vsel %vm598_vm3, %v647_v32, 0  ;;  %2204 = vmatprep.subr.bf16.mxu1 %v2670_v10 }
 0x1eb   : > { %2199 = vmatpush3.bf16.xpose.msra.mxu0 %v652_v34 }
 0x1ec   : > { %2210 = vmatprep.subr.bf16.mxu0 %v2670_v10 }
 0x1f0   : > { %2195 = vmatmul.mubr.msk.bf16.vlgmr.msra.gmra.mrb[4].mxu1 %vm598_vm3, %v3006_v36 }
 0x1f1   : > { %2206 = vmatprep.mubr.msk.bf16.mxu1 %vm2671_vm1, %v2670_v10 }
 0x1f2   : > { %2201 = vmatmul.mubr.msk.bf16.vlgmr.msra.gmra.mrb[0].mxu0 %vm598_vm3, %v3008_v37 }
 0x1f3   : > { %2212 = vmatprep.mubr.msk.bf16.mxu0 %vm2671_vm1, %v2670_v10 }
 0x2c3   : > { %v639_v39 = vpop.f32.mrb[4].mxu1 }
 0x2c4   : > { %v640_v40 = vadd.f32 %v639_v39, %v3018_v38  ;;  %v2196_v41 = vpop.f32.mrb[5].mxu1 }
 0x2c5   : > { %v642_v42 = vpop.f32.mrb[6].mxu1  ;;  %v688_v43 = vpop.f32.mrb[0].mxu0 }
 0x2c6   : > { %v689_v44 = vadd.f32 %v688_v43, %v3018_v38  ;;  %v2197_v45 = vpop.f32.mrb[7].mxu1  ;;  %v2202_v46 = vpop.f32.mrb[1].mxu0  ;;  %v694_v47 = vsel %vm598_vm3, %v640_v40, -inf }
 0x2c7   : > { %v691_v48 = vpop.f32.mrb[2].mxu0  ;;  %695 = vmax.xlane.f32.xlu1 %v694_v47 }
 0x2c8   : > { %v2203_v49 = vpop.f32.mrb[3].mxu0  ;;  %v697_v50 = vsel %vm598_vm3, %v689_v44, -inf }
 0x2c9   : > { %698 = vmax.xlane.f32.xlu0 %v697_v50 }
 0x2df   : > { %579 = vrot.lane.b32.xlu0 %v577_v52, %s2674_s17 }
 0x354   : > { %v696_v59 = vpop.xlane.xlu1 %695 }
 0x355   : > { %v700_v60 = vsub.f32 %v640_v40, %v696_v59 }
 0x356   : > { %v699_v53 = vpop.xlane.xlu0 %698 }
 0x357   : > { %v702_v61 = vmul.f32 1.442695, %v700_v60  ;;  %v701_v62 = vsub.f32 %v689_v44, %v699_v53 }
 0x359   : > { %2435 = vpow2.f32 %v702_v61  ;;  %v704_v63 = vmul.f32 1.442695, %v701_v62 }
 0x35a   : > { %v580_v54 = vpop.permute.xlu0 %579 }
 0x35b   : > { %v582_v55 = vadd.f32 %v580_v54, %v551_v20  ;;  %v583_v56 = vadd.f32 %v580_v54, %v554_v23  ;;  %2437 = vpow2.f32 %v704_v63 }
 0x35d   : > { %v3026_v57 = vpack.c.bf16 %v582_v55, %v582_v55  ;;  %v3028_v58 = vpack.c.bf16 %v583_v56, %v583_v56 }
 0x35f   : > { %769 = vrot.lane.b32.xlu0 %v3028_v58, %s2674_s17  ;;  %719 = vrot.lane.b32.xlu1 %v3026_v57, %s2674_s17 }
 0x363   : > { %821 = vrot.lane.b32.xlu0 %v2992_v24, %s2675_s24  ;;  %v2436_v0 = vpop.eup %2435 }
 0x364   : > { %v706_v1 = vsel %vm598_vm3, %v2436_v0, 0.0 }
 0x365   : > { %v2438_v2 = vpop.eup %2437 }
 0x366   : > { %v709_v3 = vsel %vm598_vm3, %v2438_v2, 0.0 }
 0x367   : > { %819 = vrot.lane.b32.xlu0 %v3006_v36, %s2676_s26 }
 0x383   : > { %707 = vadd.xlane.f32.xlu1 %v706_v1 }
 0x387   : > { %710 = vadd.xlane.f32.xlu1 %v709_v3 }
 0x398   : > { %872 = vrot.lane.b32.xlu1 %v2994_v27, %s2675_s24 }
 0x39c   : > { %870 = vrot.lane.b32.xlu1 %v3008_v37, %s2676_s26 }
 0x3d1   : > { %v770_v4 = vpop.permute.xlu0 %769  ;;  %v720_v5 = vpop.permute.xlu1 %719 }
 0x3d2   : > { %v775_v6 = vsel %vm724_vm4, %v770_v4, 0  ;;  %v726_v7 = vsel %vm724_vm4, %v720_v5, 0 }
 0x3d3   : > { %2205 = vmatpush3.bf16.msra.mxu1 %v726_v7  ;;  %2211 = vmatpush3.bf16.msra.mxu0 %v775_v6 }
 0x3d4   : > { %2216 = vmatprep.subr.bf16.mxu1 %v2670_v10  ;;  %2222 = vmatprep.subr.bf16.mxu0 %v2670_v10 }
 0x3d5   : > { %v822_v17 = vpop.permute.xlu0 %821 }
 0x3d6   : > { %v827_v20 = vsel %vm598_vm3, %v822_v17, 0 }
 0x3d9   : > { %v820_v26 = vpop.permute.xlu0 %819 }
 0x410   : > { %v708_v8 = vpop.xlane.xlu1 %707 }
 0x411   : > { %2439 = vrcp.f32 %v708_v8 }
 0x414   : > { %v711_v9 = vpop.xlane.xlu1 %710 }
 0x415   : > { %2441 = vrcp.f32 %v711_v9  ;;  %v585_v9 = vld [vmem:[%s2950_s25 + $0x4] sm:$0xf] }
 0x416   : > { %v1045_v17 = vsel %vm724_vm4, %v585_v9, 0 }
 0x418   : > { %v873_v22 = vpop.permute.xlu1 %872 }
 0x419   : > { %v878_v25 = vsel %vm598_vm3, %v873_v22, 0 }
 0x41b   : > { %v2440_v11 = vpop.eup %2439 }
 0x41c   : > { %v714_v16 = vmul.f32 %v2440_v11, %v2436_v0  ;;  %v871_v29 = vpop.permute.xlu1 %870 }
 0x41e   : > { %v716_v18 = vpack.c.bf16 %v714_v16, %v714_v16 }
 0x41f   : > { %v2442_v19 = vpop.eup %2441 }
 0x420   : > { %v715_v21 = vmul.f32 %v2442_v19, %v2438_v2  ;;  %2207 = vmatmul.mubr.msk.bf16.vlgmr.msra.gmra.mrb[8].mxu1 %vm598_vm3, %v716_v18  ;;  %v584_v19 = vld [vmem:[%s2950_s25] sm:$0xf] }
 0x421   : > { %2217 = vmatpush3.bf16.xpose.msra.mxu1 %v827_v20  ;;  %2218 = vmatprep.mubr.msk.bf16.mxu1 %vm2671_vm1, %v2670_v10  ;;  %v1092_v22 = vsel %vm724_vm4, %v584_v19, 0 }
 0x422   : > { %v717_v23 = vpack.c.bf16 %v715_v21, %v715_v21  ;;  %2228 = vmatprep.subr.bf16.mxu1 %v2670_v10 }
 0x424   : > { %2213 = vmatmul.mubr.msk.bf16.vlgmr.msra.gmra.mrb[4].mxu0 %vm598_vm3, %v717_v23 }
 0x425   : > { %2223 = vmatpush3.bf16.xpose.msra.mxu0 %v878_v25  ;;  %2224 = vmatprep.mubr.msk.bf16.mxu0 %vm2671_vm1, %v2670_v10 }
 0x426   : > { %2234 = vmatprep.subr.bf16.mxu0 %v2670_v10 }
 0x428   : > { %2219 = vmatmul.mubr.msk.bf16.vlgmr.msra.gmra.mrb[12].mxu1 %vm598_vm3, %v820_v26 }
 0x429   : > { %2230 = vmatprep.mubr.msk.bf16.mxu1 %vm2671_vm1, %v2670_v10 }
 0x42c   : > { %2225 = vmatmul.mubr.msk.bf16.vlgmr.msra.gmra.mrb[8].mxu0 %vm598_vm3, %v871_v29 }
 0x42d   : > { %2236 = vmatprep.mubr.msk.bf16.mxu0 %vm2671_vm1, %v2670_v10 }
 0x4f3   : > { %v3058_v30 = vpop.f32.mrb[8].mxu1 }
 0x4f4   : > { %v2208_v31 = vpop.f32.mrb[9].mxu1 }
 0x4f5   : > { %v765_v32 = vpop.f32.mrb[10].mxu1 }
 0x4f6   : > { %v2209_v33 = vpop.f32.mrb[11].mxu1 }
 0x4f7   : > { %v3060_v34 = vpop.f32.mrb[4].mxu0 }
 0x4f8   : > { %v817_v35 = vpack.c.bf16 %v3060_v34, %v3058_v30  ;;  %v2214_v39 = vpop.f32.mrb[5].mxu0 }
 0x4f9   : > { %v814_v40 = vpop.f32.mrb[6].mxu0 }
 0x4fa   : > { %v2215_v41 = vpop.f32.mrb[7].mxu0 }
 0x4fb   : > { %v863_v42 = vpop.f32.mrb[12].mxu1 }
 0x4fc   : > { %v864_v43 = vadd.f32 %v863_v42, %v3018_v38  ;;  %v2220_v44 = vpop.f32.mrb[13].mxu1 }
 0x4fd   : > { %v866_v45 = vpop.f32.mrb[14].mxu1 }
 0x4fe   : > { %v2221_v46 = vpop.f32.mrb[15].mxu1  ;;  %v920_v47 = vsel %vm598_vm3, %v864_v43, -inf }
 0x4ff   : > { %v914_v48 = vpop.f32.mrb[8].mxu0  ;;  %921 = vmax.xlane.f32.xlu0 %v920_v47 }
 0x500   : > { %v915_v49 = vadd.f32 %v914_v48, %v3018_v38  ;;  %v2226_v50 = vpop.f32.mrb[9].mxu0 }
 0x501   : > { %v917_v51 = vpop.f32.mrb[10].mxu0 }
 0x502   : > { %v2227_v52 = vpop.f32.mrb[11].mxu0  ;;  %v923_v53 = vsel %vm598_vm3, %v915_v49, -inf }
 0x503   : > { %924 = vmax.xlane.f32.xlu1 %v923_v53 }
 0x514   : > { %944 = vrot.lane.b32.xlu1 %v3026_v57, %s2677_s27 }
 0x518   : > { %1137 = vrot.lane.b32.xlu1 %v2992_v24, %s2678_s29 }
 0x51c   : > { %1187 = vrot.lane.b32.xlu1 %v2994_v27, %s2678_s29 }
 0x520   : > { %1185 = vrot.lane.b32.xlu1 %v3008_v37, %s2679_s14 }
 0x58c   : > { %v922_v54 = vpop.xlane.xlu0 %921 }
 0x58d   : > { %v926_v55 = vsub.f32 %v864_v43, %v922_v54 }
 0x58f   : > { %v928_v56 = vmul.f32 1.442695, %v926_v55 }
 0x590   : > { %v925_v59 = vpop.xlane.xlu1 %924 }
 0x591   : > { %2443 = vpow2.f32 %v928_v56  ;;  %v927_v60 = vsub.f32 %v915_v49, %v925_v59 }
 0x593   : > { %v930_v61 = vmul.f32 1.442695, %v927_v60 }
 0x594   : > { %v945_v62 = vpop.permute.xlu1 %944 }
 0x595   : > { %2445 = vpow2.f32 %v930_v61  ;;  %v950_v63 = vsel %vm724_vm4, %v945_v62, 0 }
 0x596   : > { %2229 = vmatpush3.bf16.msra.mxu1 %v950_v63 }
 0x597   : > { %2240 = vmatprep.subr.bf16.mxu1 %v2670_v10 }
 0x598   : > { %v1138_v23 = vpop.permute.xlu1 %1137 }
 0x599   : > { %v1143_v41 = vsel %vm598_vm3, %v1138_v23, 0 }
 0x59b   : > { %v2444_v0 = vpop.eup %2443 }
 0x59c   : > { %v932_v1 = vsel %vm598_vm3, %v2444_v0, 0.0  ;;  %v1188_v25 = vpop.permute.xlu1 %1187 }
 0x59d   : > { %933 = vadd.xlane.f32.xlu0 %v932_v1  ;;  %v1193_v26 = vsel %vm598_vm3, %v1188_v25, 0 }
 0x59f   : > { %v2446_v2 = vpop.eup %2445 }
 0x5a0   : > { %v935_v3 = vsel %vm598_vm3, %v2446_v2, 0.0  ;;  %v1186_v29 = vpop.permute.xlu1 %1185 }
 0x5a1   : > { %936 = vadd.xlane.f32.xlu0 %v935_v3 }
 0x5b7   : > { %992 = vrot.lane.b32.xlu0 %v3028_v58, %s2677_s27 }
 0x5bb   : > { %1135 = vrot.lane.b32.xlu0 %v3006_v36, %s2679_s14 }
 0x62a   : > { %v934_v4 = vpop.xlane.xlu0 %933 }
 0x62b   : > { %2447 = vrcp.f32 %v934_v4 }
 0x62e   : > { %v937_v5 = vpop.xlane.xlu0 %936 }
 0x62f   : > { %2449 = vrcp.f32 %v937_v5 }
 0x632   : > { %v993_v6 = vpop.permute.xlu0 %992 }
 0x633   : > { %v998_v7 = vsel %vm724_vm4, %v993_v6, 0 }
 0x634   : > { %2235 = vmatpush3.bf16.msra.mxu0 %v998_v7 }
 0x635   : > { %v2448_v8 = vpop.eup %2447  ;;  %2246 = vmatprep.subr.bf16.mxu0 %v2670_v10 }
 0x636   : > { %v940_v11 = vmul.f32 %v2448_v8, %v2444_v0  ;;  %v1136_v45 = vpop.permute.xlu0 %1135 }
 0x638   : > { %v942_v16 = vpack.c.bf16 %v940_v11, %v940_v11 }
 0x639   : > { %v2450_v18 = vpop.eup %2449 }
 0x63a   : > { %v941_v20 = vmul.f32 %v2450_v18, %v2446_v2  ;;  %2231 = vmatmul.mubr.msk.bf16.vlgmr.msra.gmra.mrb[16].mxu1 %vm598_vm3, %v942_v16 }
 0x63b   : > { %2241 = vmatpush3.bf16.msra.mxu1 %v1045_v17  ;;  %2242 = vmatprep.mubr.msk.bf16.mxu1 %vm2671_vm1, %v2670_v10 }
 0x63c   : > { %v943_v21 = vpack.c.bf16 %v941_v20, %v941_v20  ;;  %2252 = vmatprep.subr.bf16.mxu1 %v2670_v10 }
 0x63e   : > { %2237 = vmatmul.mubr.msk.bf16.vlgmr.msra.gmra.mrb[12].mxu0 %vm598_vm3, %v943_v21 }
 0x63f   : > { %2247 = vmatpush3.bf16.msra.mxu0 %v1092_v22  ;;  %2248 = vmatprep.mubr.msk.bf16.mxu0 %vm2671_vm1, %v2670_v10 }
 0x640   : > { %2258 = vmatprep.subr.bf16.mxu0 %v2670_v10 }
 0x646   : > { %2249 = vmatmul.mubr.msk.bf16.vlgmr.msra.gmra.mrb[16].mxu0 %vm598_vm3, %v817_v35 }
 0x647   : > { %2260 = vmatprep.mubr.msk.bf16.mxu0 %vm2671_vm1, %v2670_v10 }
 0x648   : > { %2259 = vmatpush3.bf16.xpose.msra.mxu0 %v1193_v26 }
 0x649   : > { %2270 = vmatprep.subr.bf16.mxu0 %v2670_v10 }
 0x64f   : > { %2261 = vmatmul.mubr.msk.bf16.vlgmr.msra.gmra.mrb[20].mxu0 %vm598_vm3, %v1186_v29 }
 0x650   : > { %2272 = vmatprep.mubr.msk.bf16.mxu0 %vm2671_vm1, %v2670_v10 }
 0x70d   : > { %v986_v31 = vpop.f32.mrb[16].mxu1 }
 0x70e   : > { %v2232_v32 = vpop.f32.mrb[17].mxu1 }
 0x70f   : > { %v989_v33 = vpop.f32.mrb[18].mxu1 }
 0x710   : > { %v2233_v30 = vpop.f32.mrb[19].mxu1 }
 0x711   : > { %v1034_v34 = vpop.f32.mrb[12].mxu0  ;;  %v586_v30 = vld [vmem:[%s2950_s25 + $0x8] sm:$0xf] }
 0x712   : > { %v1040_v35 = vpack.c.bf16 %v1034_v34, %v986_v31  ;;  %v2238_v39 = vpop.f32.mrb[13].mxu0  ;;  %v1360_v34 = vsel %vm724_vm4, %v586_v30, 0 }
 0x713   : > { %v1037_v40 = vpop.f32.mrb[14].mxu0 }
 0x714   : > { %v2239_v42 = vpop.f32.mrb[15].mxu0  ;;  %2243 = vmatmul.mubr.msk.bf16.vlgmr.msra.gmra.mrb[20].mxu1 %vm598_vm3, %v1040_v35 }
 0x715   : > { %2253 = vmatpush3.bf16.xpose.msra.mxu1 %v1143_v41  ;;  %2254 = vmatprep.mubr.msk.bf16.mxu1 %vm2671_vm1, %v2670_v10 }
 0x716   : > { %2264 = vmatprep.subr.bf16.mxu1 %v2670_v10 }
 0x719   : > { %v1128_v43 = vpop.f32.mrb[16].mxu0 }
 0x71a   : > { %v2250_v44 = vpop.f32.mrb[17].mxu0 }
 0x71b   : > { %v1131_v46 = vpop.f32.mrb[18].mxu0 }
 0x71c   : > { %v2251_v47 = vpop.f32.mrb[19].mxu0  ;;  %2255 = vmatmul.mubr.msk.bf16.vlgmr.msra.gmra.mrb[24].mxu1 %vm598_vm3, %v1136_v45 }
 0x71d   : > { %2266 = vmatprep.mubr.msk.bf16.mxu1 %vm2671_vm1, %v2670_v10 }
 0x722   : > { %v1229_v48 = vpop.f32.mrb[20].mxu0 }
 0x723   : > { %v1230_v49 = vadd.f32 %v1229_v48, %v3018_v38  ;;  %v2262_v50 = vpop.f32.mrb[21].mxu0 }
 0x724   : > { %v1232_v51 = vpop.f32.mrb[22].mxu0 }
 0x725   : > { %v2263_v52 = vpop.f32.mrb[23].mxu0  ;;  %v1238_v53 = vsel %vm598_vm3, %v1230_v49, -inf }
 0x726   : > { %1239 = vmax.xlane.f32.xlu1 %v1238_v53 }
 0x737   : > { %1259 = vrot.lane.b32.xlu1 %v3026_v57, %s2680_s30 }
 0x73b   : > { %1407 = vrot.lane.b32.xlu1 %v2992_v24, %s2681_s23 }
 0x73f   : > { %1457 = vrot.lane.b32.xlu1 %v2994_v27, %s2681_s23 }
 0x743   : > { %1455 = vrot.lane.b32.xlu1 %v3008_v37, %s2682_s20 }
 0x7b3   : > { %v1240_v54 = vpop.xlane.xlu1 %1239 }
 0x7b4   : > { %v1242_v59 = vsub.f32 %v1230_v49, %v1240_v54 }
 0x7b6   : > { %v1245_v60 = vmul.f32 1.442695, %v1242_v59 }
 0x7b7   : > { %v1260_v55 = vpop.permute.xlu1 %1259 }
 0x7b8   : > { %v1265_v56 = vsel %vm724_vm4, %v1260_v55, 0  ;;  %2451 = vpow2.f32 %v1245_v60 }
 0x7b9   : > { %2265 = vmatpush3.bf16.msra.mxu1 %v1265_v56 }
 0x7ba   : > { %2276 = vmatprep.subr.bf16.mxu1 %v2670_v10 }
 0x7bb   : > { %v1408_v26 = vpop.permute.xlu1 %1407 }
 0x7bc   : > { %v1413_v31 = vsel %vm598_vm3, %v1408_v26, 0 }
 0x7bf   : > { %v1458_v42 = vpop.permute.xlu1 %1457 }
 0x7c0   : > { %v1463_v47 = vsel %vm598_vm3, %v1458_v42, 0 }
 0x7c2   : > { %v2452_v6 = vpop.eup %2451 }
 0x7c3   : > { %v1250_v7 = vsel %vm598_vm3, %v2452_v6, 0.0  ;;  %v1456_v55 = vpop.permute.xlu1 %1455 }
 0x7e7   : > { %v1081_v61 = vpop.f32.mrb[20].mxu1 }
 0x7e8   : > { %v3121_v62 = vadd.f32 %v1128_v43, %v1081_v61  ;;  %v2244_v63 = vpop.f32.mrb[21].mxu1 }
 0x7e9   : > { %v1084_v24 = vpop.f32.mrb[22].mxu1 }
 0x7ea   : > { %v3123_v27 = vadd.f32 %v1131_v46, %v1084_v24  ;;  %v2245_v0 = vpop.f32.mrb[23].mxu1 }
 0x7ef   : > { %v1179_v1 = vpop.f32.mrb[24].mxu1 }
 0x7f0   : > { %v1180_v37 = vadd.f32 %v1179_v1, %v3018_v38  ;;  %v2256_v2 = vpop.f32.mrb[25].mxu1 }
 0x7f1   : > { %v1182_v3 = vpop.f32.mrb[26].mxu1 }
 0x7f2   : > { %v2257_v4 = vpop.f32.mrb[27].mxu1  ;;  %v1235_v5 = vsel %vm598_vm3, %v1180_v37, -inf }
 0x7f3   : > { %1236 = vmax.xlane.f32.xlu0 %v1235_v5 }
 0x7f7   : > { %1251 = vadd.xlane.f32.xlu0 %v1250_v7 }
 0x880   : > { %v1237_v8 = vpop.xlane.xlu0 %1236 }
 0x881   : > { %v1241_v9 = vsub.f32 %v1180_v37, %v1237_v8 }
 0x883   : > { %v1243_v11 = vmul.f32 1.442695, %v1241_v9 }
 0x884   : > { %v1252_v18 = vpop.xlane.xlu0 %1251 }
 0x885   : > { %2453 = vpow2.f32 %v1243_v11 }
 0x886   : > { %2455 = vrcp.f32 %v1252_v18 }
 0x88f   : > { %v2454_v16 = vpop.eup %2453 }
 0x890   : > { %v1247_v17 = vsel %vm598_vm3, %v2454_v16, 0.0  ;;  %v2456_v19 = vpop.eup %2455 }
 0x891   : > { %1248 = vadd.xlane.f32.xlu0 %v1247_v17  ;;  %v1256_v21 = vmul.f32 %v2456_v19, %v2452_v6 }
 0x893   : > { %v1258_v25 = vpack.c.bf16 %v1256_v21, %v1256_v21 }
 0x8a7   : > { %1307 = vrot.lane.b32.xlu0 %v3028_v58, %s2680_s30 }
 0x8ab   : > { %1405 = vrot.lane.b32.xlu0 %v3006_v36, %s2682_s20 }
 0x91e   : > { %v1249_v20 = vpop.xlane.xlu0 %1248 }
 0x91f   : > { %2457 = vrcp.f32 %v1249_v20 }
 0x922   : > { %v1308_v22 = vpop.permute.xlu0 %1307 }
 0x923   : > { %v1313_v23 = vsel %vm724_vm4, %v1308_v22, 0  ;;  %v587_v22 = vld [vmem:[%s2950_s25 + $0xc] sm:$0xf] }
 0x924   : > { %2271 = vmatpush3.bf16.msra.mxu0 %v1313_v23  ;;  %v1630_v23 = vsel %vm724_vm4, %v587_v22, 0 }
 0x925   : > { %2282 = vmatprep.subr.bf16.mxu0 %v2670_v10 }
 0x926   : > { %v1406_v33 = vpop.permute.xlu0 %1405 }
 0x927   : > { %2273 = vmatmul.mubr.msk.bf16.vlgmr.msra.gmra.mrb[24].mxu0 %vm598_vm3, %v1258_v25 }
 0x928   : > { %2284 = vmatprep.mubr.msk.bf16.mxu0 %vm2671_vm1, %v2670_v10 }
 0x929   : > { %v2458_v36 = vpop.eup %2457 }
 0x92a   : > { %v1255_v29 = vmul.f32 %v2458_v36, %v2454_v16 }
 0x92c   : > { %v1257_v32 = vpack.c.bf16 %v1255_v29, %v1255_v29 }
 0x92d   : > { %2283 = vmatpush3.bf16.xpose.msra.mxu0 %v1413_v31 }
 0x92e   : > { %2267 = vmatmul.mubr.msk.bf16.vlgmr.msra.gmra.mrb[28].mxu1 %vm598_vm3, %v1257_v32  ;;  %2294 = vmatprep.subr.bf16.mxu0 %v2670_v10 }
 0x92f   : > { %2278 = vmatprep.mubr.msk.bf16.mxu1 %vm2671_vm1, %v2670_v10  ;;  %2277 = vmatpush3.bf16.msra.mxu1 %v1360_v34 }
 0x930   : > { %2288 = vmatprep.subr.bf16.mxu1 %v2670_v10 }
 0x934   : > { %2285 = vmatmul.mubr.msk.bf16.vlgmr.msra.gmra.mrb[28].mxu0 %vm598_vm3, %v1406_v33 }
 0x935   : > { %2296 = vmatprep.mubr.msk.bf16.mxu0 %vm2671_vm1, %v2670_v10 }
 0x9fa   : > { %v1349_v35 = vpop.f32.mrb[24].mxu0 }
 0x9fb   : > { %v2274_v39 = vpop.f32.mrb[25].mxu0 }
 0x9fc   : > { %v1352_v40 = vpop.f32.mrb[26].mxu0 }
 0x9fd   : > { %v2275_v41 = vpop.f32.mrb[27].mxu0 }
 0xa01   : > { %v1301_v43 = vpop.f32.mrb[28].mxu1 }
 0xa02   : > { %v1355_v44 = vpack.c.bf16 %v1349_v35, %v1301_v43  ;;  %v2268_v45 = vpop.f32.mrb[29].mxu1  ;;  %v1677_v43 = vsub.s32 3, %v2979_v15 }
 0xa03   : > { %v1304_v46 = vpop.f32.mrb[30].mxu1 }
 0xa04   : > { %v2269_v48 = vpop.f32.mrb[31].mxu1  ;;  %2279 = vmatmul.mubr.msk.bf16.vlgmr.msra.gmra.mrb[32].mxu1 %vm598_vm3, %v1355_v44  ;;  %v1678_v44 = vrot.slane %v2977_v14, %v1677_v43 }
 0xa05   : > { %2289 = vmatpush3.bf16.xpose.msra.mxu1 %v1463_v47  ;;  %2290 = vmatprep.mubr.msk.bf16.mxu1 %vm2671_vm1, %v2670_v10 }
 0xa06   : > { %2300 = vmatprep.subr.bf16.mxu1 %v2670_v10 }
 0xa07   : > { %v1449_v49 = vpop.f32.mrb[28].mxu0 }
 0xa08   : > { %v1450_v50 = vadd.f32 %v1449_v49, %v3018_v38  ;;  %v2286_v51 = vpop.f32.mrb[29].mxu0 }
 0xa09   : > { %v1452_v52 = vpop.f32.mrb[30].mxu0 }
 0xa0a   : > { %v2287_v53 = vpop.f32.mrb[31].mxu0  ;;  %v1505_v54 = vsel %vm598_vm3, %v1450_v50, -inf }
 0xa0b   : > { %1506 = vmax.xlane.f32.xlu0 %v1505_v54 }
 0xa0c   : > { %2291 = vmatmul.mubr.msk.bf16.vlgmr.msra.gmra.mrb[36].mxu1 %vm598_vm3, %v1456_v55 }
 0xa0d   : > { %2302 = vmatprep.mubr.msk.bf16.mxu1 %vm2671_vm1, %v2670_v10 }
 0xa98   : > { %v1507_v56 = vpop.xlane.xlu0 %1506 }
 0xa99   : > { %v1511_v59 = vsub.f32 %v1450_v50, %v1507_v56 }
 0xa9b   : > { %v1513_v60 = vmul.f32 1.442695, %v1511_v59 }
 0xa9d   : > { %2459 = vpow2.f32 %v1513_v60 }
 0xaa7   : > { %v2460_v61 = vpop.eup %2459 }
 0xaa8   : > { %v1517_v63 = vsel %vm598_vm3, %v2460_v61, 0.0 }
 0xaa9   : > { %1518 = vadd.xlane.f32.xlu0 %v1517_v63 }
 0xad7   : > { %v1396_v24 = vpop.f32.mrb[32].mxu1 }
 0xad8   : > { %v1403_v0 = vadd.f32 %v1396_v24, %v3121_v62  ;;  %v2280_v1 = vpop.f32.mrb[33].mxu1 }
 0xad9   : > { %v1399_v37 = vpop.f32.mrb[34].mxu1 }
 0xada   : > { %v3162_v2 = vadd.f32 %v1399_v37, %v3123_v27  ;;  %v2281_v3 = vpop.f32.mrb[35].mxu1 }
 0xadb   : > { %v2430_v3 = vld [vmem:[%s2955_s22 + $0x8] sm:$0xff]  }
 0xadf   : > { %v1499_v4 = vpop.f32.mrb[36].mxu1 }
 0xae0   : > { %v1500_v5 = vadd.f32 %v1499_v4, %v3018_v38  ;;  %v2292_v6 = vpop.f32.mrb[37].mxu1  ;;  %v2431_v4 = vld [vmem:[%s2960_s9] sm:$0xff]  }
 0xae1   : > { %v1502_v7 = vpop.f32.mrb[38].mxu1 }
 0xae2   : > { %v2293_v8 = vpop.f32.mrb[39].mxu1  ;;  %v1508_v9 = vsel %vm598_vm3, %v1500_v5, -inf }
 0xae3   : > { %1509 = vmax.xlane.f32.xlu1 %v1508_v9 }
 0xaf4   : > { %1529 = vrot.lane.b32.xlu1 %v3026_v57, %s2683_s19 }
 0xb36   : > { %v1519_v11 = vpop.xlane.xlu0 %1518 }
 0xb37   : > { %2461 = vrcp.f32 %v1519_v11 }
 0xb41   : > { %v2462_v62 = vpop.eup %2461 }
 0xb42   : > { %v1525_v17 = vmul.f32 %v2462_v62, %v2460_v61 }
 0xb44   : > { %v1527_v20 = vpack.c.bf16 %v1525_v17, %v1525_v17  ;;  %v1718_v17 = vsub.s32 5, %v2979_v15 }
 0xb70   : > { %v1510_v16 = vpop.xlane.xlu1 %1509 }
 0xb71   : > { %v1512_v27 = vsub.f32 %v1500_v5, %v1510_v16  ;;  %v2432_v5 = vld [vmem:[%s2960_s9 + $0x8] sm:$0xff]   ;;  %v1712_v16 = vsub.s32 4, %v2979_v15 }
 0xb73   : > { %v1515_v18 = vmul.f32 1.442695, %v1512_v27  ;;  %v1713_v27 = vrot.slane %v2977_v14, %v1712_v16 }
 0xb74   : > { %v1530_v19 = vpop.permute.xlu1 %1529 }
 0xb75   : > { %2463 = vpow2.f32 %v1515_v18  ;;  %v1535_v38 = vsel %vm724_vm4, %v1530_v19, 0 }
 0xb76   : > { %2295 = vmatpush3.bf16.msra.mxu0 %v1535_v38 }
 0xb77   : > { %2306 = vmatprep.subr.bf16.mxu0 %v2670_v10 }
 0xb79   : > { %2297 = vmatmul.mubr.msk.bf16.vlgmr.msra.gmra.mrb[32].mxu0 %vm598_vm3, %v1527_v20 }
 0xb7a   : > { %2308 = vmatprep.mubr.msk.bf16.mxu0 %vm2671_vm1, %v2670_v10  ;;  %2307 = vmatpush3.bf16.msra.mxu0 %v1630_v23 }
 0xb7b   : > { %2320 = vmatprep.subr.bf16.mxu0 %v2670_v10 }
 0xb7f   : > { %v2464_v57 = vpop.eup %2463 }
 0xb80   : > { %v1520_v21 = vsel %vm598_vm3, %v2464_v57, 0.0 }
 0xb81   : > { %1521 = vadd.xlane.f32.xlu0 %v1520_v21  ;;  %v1719_v21 = vrot.slane %v2977_v14, %v1718_v17 }
 0xb97   : > { %1577 = vrot.lane.b32.xlu0 %v3028_v58, %s2683_s19 }
 0xc0e   : > { %v1522_v25 = vpop.xlane.xlu0 %1521 }
 0xc0f   : > { %2465 = vrcp.f32 %v1522_v25 }
 0xc12   : > { %v1578_v36 = vpop.permute.xlu0 %1577 }
 0xc13   : > { %v1583_v26 = vsel %vm724_vm4, %v1578_v36, 0 }
 0xc14   : > { %2301 = vmatpush3.bf16.msra.mxu1 %v1583_v26  ;;  %v2433_v26 = vld [vmem:[%s2960_s9 + $0x10] sm:$0xff]  }
 0xc15   : > { %2312 = vmatprep.subr.bf16.mxu1 %v2670_v10 }
 0xc19   : > { %v2466_v29 = vpop.eup %2465 }
 0xc1a   : > { %v1526_v31 = vmul.f32 %v2466_v29, %v2464_v57  ;;  %v2434_v29 = vld [vmem:[%s2960_s9 + $0x18] sm:$0xff]  }
 0xc1c   : > { %v1528_v32 = vpack.c.bf16 %v1526_v31, %v1526_v31  ;;  %v2114_v31 = vld [vmem:[%s474_s12] ss:$0 sm:$0xff] }
 0xc1e   : > { %2303 = vmatmul.mubr.msk.bf16.vlgmr.msra.gmra.mrb[40].mxu1 %vm598_vm3, %v1528_v32 }
 0xc1f   : > { %2316 = vmatprep.mubr.msk.bf16.mxu1 %vm2671_vm1, %v2670_v10 }
 0xc4c   : > { %v1571_v58 = vpop.f32.mrb[32].mxu0 }
 0xc4d   : > { %v2298_v33 = vpop.f32.mrb[33].mxu0 }
 0xc4e   : > { %v1574_v30 = vpop.f32.mrb[34].mxu0 }
 0xc4f   : > { %v2299_v34 = vpop.f32.mrb[35].mxu0 }
 0xcf1   : > { %v1619_v35 = vpop.f32.mrb[40].mxu1 }
 0xcf2   : > { %v1625_v39 = vpack.c.bf16 %v1619_v35, %v1571_v58  ;;  %v2304_v40 = vpop.f32.mrb[41].mxu1 }
 0xcf3   : > { %v1622_v41 = vpop.f32.mrb[42].mxu1 }
 0xcf4   : > { %v2305_v42 = vpop.f32.mrb[43].mxu1  ;;  %2309 = vmatmul.mubr.msk.bf16.vlgmr.msra.gmra.mrb[36].mxu0 %vm598_vm3, %v1625_v39  ;;  %v494_v41 = vld [vmem:[%s2932_s21 + $0x8] sm:$0xff] }
 0xcf5   : > { %2328 = vmatprep.mubr.msk.bf16.mxu0 %vm2671_vm1, %v2670_v10  ;;  %2321 = vmatpush3.bf16.msra.mxu0 %v2431_v4  ;;  %v2475_v4 = vld [vmem:[%s2932_s21] sm:$0xff] }
 0xcf6   : > { %2322 = vmatprep.subr.bf16.mxu0 %v2670_v10 }
 0xcf9   : > { %2323 = vmatpush3.bf16.msra.mxu0 %v2432_v5 }
 0xcfa   : > { %2324 = vmatprep.subr.bf16.mxu0 %v2670_v10 }
 0xcfd   : > { %2325 = vmatpush3.bf16.msra.mxu0 %v2433_v26 }
 0xcfe   : > { %2326 = vmatprep.subr.bf16.mxu0 %v2670_v10 }
 0xd01   : > { %2327 = vmatpush3.bf16.msra.mxu0 %v2434_v29 }
 0xdc7   : > { %v1666_v45 = vpop.f32.mrb[36].mxu0 }
 0xdc8   : > { %v1673_v46 = vadd.f32 %v1666_v45, %v1403_v0  ;;  %v2310_v47 = vpop.f32.mrb[37].mxu0 }
 0xdc9   : > { %v1669_v48 = vpop.f32.mrb[38].mxu0 }
 0xdca   : > { %v1679_v49 = vadd.f32 %v1678_v44, %v1673_v46  ;;  %v1674_v50 = vadd.f32 %v1669_v48, %v3162_v2  ;;  %v2311_v51 = vpop.f32.mrb[39].mxu0  ;;  %v2429_v2 = vld [vmem:[%s2955_s22] sm:$0xff]  }
 0xdcb   : > { %2313 = vmatpush3.bf16.msra.mxu1 %v2429_v2  ;;  %v1903_v2 = vsub.s32 6, %v2979_v15 }
 0xdcc   : > { %v1680_v52 = vadd.f32 %v1678_v44, %v1674_v50  ;;  %v1681_v53 = vadd.f32 %v1679_v49, %v2972_v12  ;;  %2314 = vmatprep.subr.bf16.mxu1 %v2670_v10  ;;  %v1803_v10 = vrot.slane %v494_v41, %v560_v28 }
 0xdcd   : > { %v1904_v5 = vrot.slane %v2475_v4, %v1903_v2 }
 0xdce   : > { %v1683_v54 = vsel %vm513_vm2, %v1681_v53, 0.0  ;;  %v1682_v55 = vadd.f32 %v1680_v52, %v2974_v13 }
 0xdcf   : > { %1684 = vadd.xlane.f32.xlu1 %v1683_v54  ;;  %2315 = vmatpush3.bf16.msra.mxu1 %v2430_v3  ;;  %v1909_v3 = vsub.s32 7, %v2979_v15 }
 0xdd0   : > { %v1686_v56 = vsel %vm513_vm2, %v1682_v55, 0.0 }
 0xdd1   : > { %1687 = vadd.xlane.f32.xlu0 %v1686_v56 }
 0xe5c   : > { %v1685_v59 = vpop.xlane.xlu1 %1684 }
 0xe5d   : > { %v1690_v60 = vmul.f32 0.03125, %v1685_v59 }
 0xe5e   : > { %v1688_v61 = vpop.xlane.xlu0 %1687 }
 0xe5f   : > { %v1692_v63 = vsub.f32 %v1681_v53, %v1690_v60  ;;  %v1691_v24 = vmul.f32 0.03125, %v1688_v61 }
 0xe61   : > { %v1693_v0 = vsub.f32 %v1682_v55, %v1691_v24  ;;  %v1694_v1 = vmul.f32 %v1692_v63, %v1692_v63 }
 0xe63   : > { %v1696_v12 = vsel %vm513_vm2, %v1694_v1, 0.0  ;;  %v1695_v37 = vmul.f32 %v1693_v0, %v1693_v0 }
 0xe64   : > { %1697 = vadd.xlane.f32.xlu1 %v1696_v12 }
 0xe65   : > { %v1699_v13 = vsel %vm513_vm2, %v1695_v37, 0.0 }
 0xe66   : > { %1700 = vadd.xlane.f32.xlu0 %v1699_v13 }
 0xef1   : > { %v1698_v6 = vpop.xlane.xlu1 %1697 }
 0xef2   : > { %v1702_v7 = vmul.f32 0.03125, %v1698_v6 }
 0xef3   : > { %v1701_v8 = vpop.xlane.xlu0 %1700 }
 0xef4   : > { %v1704_v9 = vadd.f32 1e-05, %v1702_v7  ;;  %v1703_v11 = vmul.f32 0.03125, %v1701_v8  ;;  %v1910_v7 = vrot.slane %v2475_v4, %v1909_v3 }
 0xef6   : > { %2467 = vrsqrt.f32 %v1704_v9  ;;  %v1705_v62 = vadd.f32 1e-05, %v1703_v11 }
 0xef8   : > { %2469 = vrsqrt.f32 %v1705_v62 }
 0xf00   : > { %v2468_v18 = vpop.eup %2467 }
 0xf01   : > { %v1708_v19 = vmul.f32 %v2468_v18, %v1692_v63 }
 0xf02   : > { %v2470_v38 = vpop.eup %2469 }
 0xf03   : > { %v1714_v20 = vmul.f32 %v1713_v27, %v1708_v19  ;;  %v1709_v57 = vmul.f32 %v2470_v38, %v1693_v0 }
 0xf05   : > { %v1715_v22 = vmul.f32 %v1713_v27, %v1709_v57  ;;  %v1720_v23 = vadd.f32 %v1719_v21, %v1714_v20 }
 0xf07   : > { %v1721_v25 = vadd.f32 %v1719_v21, %v1715_v22 }
 0xf09   : > { %v1722_v36 = vpack.c.bf16 %v1721_v25, %v1720_v23 }
 0xf0b   : > { %2317 = vmatmul.mubr.msk.bf16.vlgmr.msra.gmra.mrb[44].mxu1 %vm513_vm2, %v1722_v36 }
 0xfde   : > { %v1782_v32 = vpop.f32.mrb[44].mxu1 }
 0xfdf   : > { %v1783_v14 = vadd.f32 %v2114_v31, %v1782_v32  ;;  %v2318_v58 = vpop.f32.mrb[45].mxu1 }
 0xfe0   : > { %v1785_v33 = vpop.f32.mrb[46].mxu1 }
 0xfe1   : > { %v1786_v30 = vadd.f32 %v2114_v31, %v1785_v33  ;;  %v2319_v34 = vpop.f32.mrb[47].mxu1  ;;  %v1789_v35 = vmax.f32 %v1783_v14, 0.0 }
 0xfe3   : > { %v1790_v39 = vmax.f32 %v1786_v30, 0.0 }
 0xfe5   : > { %v1791_v40 = vpack.c.bf16 %v1790_v39, %v1789_v35 }
 0xfe7   : > { %2329 = vmatmul.mubr.msk.bf16.vlgmr.msra.gmra.mrb[40].mxu0 %vm1828_vm5, %v1791_v40 }
0x10ba   : > { %v1866_v42 = vpop.f32.mrb[40].mxu0 }
0x10bb   : > { %v1867_v43 = vadd.f32 %v1866_v42, %v1803_v10  ;;  %v2330_v44 = vpop.f32.mrb[41].mxu0 }
0x10bc   : > { %v1869_v45 = vpop.f32.mrb[42].mxu0 }
0x10bd   : > { %v1870_v46 = vadd.f32 %v1869_v45, %v1803_v10  ;;  %v2331_v47 = vpop.f32.mrb[43].mxu0  ;;  %v1873_v48 = vadd.f32 %v1867_v43, %v1720_v23 }
0x10bf   : > { %v1875_v49 = vsel %vm513_vm2, %v1873_v48, 0.0  ;;  %v1874_v50 = vadd.f32 %v1870_v46, %v1721_v25 }
0x10c0   : > { %1876 = vadd.xlane.f32.xlu1 %v1875_v49 }
0x10c1   : > { %v1878_v51 = vsel %vm513_vm2, %v1874_v50, 0.0 }
0x10c2   : > { %1879 = vadd.xlane.f32.xlu0 %v1878_v51 }
0x114d   : > { %v1877_v52 = vpop.xlane.xlu1 %1876 }
0x114e   : > { %v1881_v53 = vmul.f32 0.03125, %v1877_v52 }
0x114f   : > { %v1880_v54 = vpop.xlane.xlu0 %1879 }
0x1150   : > { %v1883_v55 = vsub.f32 %v1873_v48, %v1881_v53  ;;  %v1882_v56 = vmul.f32 0.03125, %v1880_v54 }
0x1152   : > { %v1884_v28 = vsub.f32 %v1874_v50, %v1882_v56  ;;  %v1885_v59 = vmul.f32 %v1883_v55, %v1883_v55 }
0x1154   : > { %v1887_v60 = vsel %vm513_vm2, %v1885_v59, 0.0  ;;  %v1886_v61 = vmul.f32 %v1884_v28, %v1884_v28 }
0x1155   : > { %1888 = vadd.xlane.f32.xlu1 %v1887_v60 }
0x1156   : > { %v1890_v63 = vsel %vm513_vm2, %v1886_v61, 0.0 }
0x1157   : > { %1891 = vadd.xlane.f32.xlu0 %v1890_v63 }
0x11e2   : > { %v1889_v24 = vpop.xlane.xlu1 %1888 }
0x11e3   : > { %v1893_v0 = vmul.f32 0.03125, %v1889_v24 }
0x11e4   : > { %v1892_v1 = vpop.xlane.xlu0 %1891 }
0x11e5   : > { %v1895_v12 = vadd.f32 1e-05, %v1893_v0  ;;  %v1894_v37 = vmul.f32 0.03125, %v1892_v1 }
0x11e7   : > { %2471 = vrsqrt.f32 %v1895_v12  ;;  %v1896_v13 = vadd.f32 1e-05, %v1894_v37 }
0x11e9   : > { %2473 = vrsqrt.f32 %v1896_v13 }
0x11f1   : > { %v2472_v6 = vpop.eup %2471 }
0x11f2   : > { %v1899_v8 = vmul.f32 %v2472_v6, %v1883_v55 }
0x11f3   : > { %v2474_v9 = vpop.eup %2473 }
0x11f4   : > { %v1905_v11 = vmul.f32 %v1904_v5, %v1899_v8  ;;  %v1900_v62 = vmul.f32 %v2474_v9, %v1884_v28  ;;  %1918 = sbr.rel (%p2123_p12) target bundleno = 4603 (0x11fb), region = 80 }
0x11f6   : > { %v1911_v16 = vadd.f32 %v1910_v7, %v1905_v11  ;;  %v1906_v27 = vmul.f32 %v1904_v5, %v1900_v62 }
0x11f8   : > { %1913 = vst.msk [vmem:[#allocation2] sm:$0xff] %vm513_vm2, %v1911_v16  ;;  %v1912_v17 = vadd.f32 %v1910_v7, %v1906_v27  ;;  %1919 = vst.msk [vmem:[#allocation11] sm:$0xff] (!%p2123_p12), %vm513_vm2, %v1911_v16 }
0x11fa   : > { %1914 = vst.msk [vmem:[#allocation2 + $0x8] sm:$0xff] %vm513_vm2, %v1912_v17  ;;  %1920 = vst.msk [vmem:[#allocation11 + $0x8] sm:$0xff] (!%p2123_p12), %vm513_vm2, %v1912_v17 }
0x11fb PF: > { %p2371_p13 = scmp.eq.s32.totalorder %s2756_s13, 1  ;;  %s2684_s21 = smov [#allocation11]  }
0x11fc   : > { %s1927_s15 = sshll.u32 %s2684_s21, 4  ;;  %s1928_s15 = int_to_ptr.vmem [resolvable:$true] %s1927_s15 }
0x11fd   : > { %s2590_s9 = scalar_lea.vmem %s1928_s15, 256  ;;  %p2597_p11 = scmp.lt.s32.totalorder %s1928_s15, %s1928_s15 }
0x11fe   : > { %p2591_p0 = scmp.ne.s32.totalorder %s1928_s15, %s2590_s9  ;;  %p2598_p2 = scmp.lt.s32.totalorder %s2590_s9, %s2590_s9 }
0x1200   : > { %p2592_p3 = pnand %p2591_p0, %p2371_p13  ;;  %p2599_p7 = por %p2598_p2, %p2597_p11 }
0x1202   : > { %p2593_p9 = pneg %p2592_p3 }
0x1204   : > { %p2600_p1 = pnand %p2599_p7, %p2593_p9 }
0x1206   : > { %2603 = shalt.err (!%p2600_p1)
}
0x1207   : > { %s3294_s16 = sld [smem:[#allocation17_spill]] }
0x120d   : > { %s2604_s17 = scalar_lea.hbm %s3294_s16, 256 }
0x120e   : > { %p2605_p4 = scmp.ne.s32.totalorder %s3294_s16, %s2604_s17  ;;  %p2610_p6 = scmp.lt.u32.totalorder %s2604_s17, %s3294_s16 }
0x1210   : > { %p2606_p5 = pnand %p2605_p4, %p2371_p13 }
0x1212   : > { %p2607_p8 = pneg %p2606_p5 }
0x1214   : > { %p2612_p10 = pnand %p2610_p6, %p2607_p8 }
0x1216   : > { %2615 = shalt.err (!%p2612_p10)
}
0x1217   : > { %s2685_s14 = smov 128   ;;  %s2686_s30 = smov 8  }
0x1218   : > { %2347 = dma.vmem_to_hbm [thread:$0]  (%p2371_p13), %s1928_s15, 256, %s3294_s16, [#allocation5], %s2685_s14, %s2685_s14, %s2686_s30  }
0x1219   : > { %2645 = dma.done.wait (%p2371_p13), [#allocation5], 256  }
0x121a   : > { %2647 = vsyncadd (%p2371_p13), [#allocation5], 4294967040 }
0x121b PF: > { %p22_p12 = scmp.ge.s32.totalorder %s2865_s28, 4   ;;  %s3295_s30 = smov %s2654_s10 }
0x121c   : > { %s3296_s10 = smov %s2658_s11  ;;  %s3297_s11 = smov %s2875_s18 }
0x121d   : > { %s3298_s12 = smov %s2865_s28  ;;  %24 = sbr.rel (!%p22_p12) target bundleno = 9 (0x9), region = 129 }
0x1224   :  { %1943 = vsyncpa [#allocation4], 1 }
0x1225   :  { %1945 = vsyncpa [#allocation4 + $0x1], 1 }
0x1226   :  { %1946 = vsyncpa [#allocation7], 1 }
0x1227   :  { %1947 = vsyncpa [#allocation10], 1 }
0x1228   :  { %1949 = vsyncpa [#allocation10 + $0x1], 1 }
0x1229   :  { %1950 = vsyncpa [#allocation5], 1 }
0x122a   :  { %1952 = vsyncpa [#allocation5 + $0x1], 1 }

</bundles_post_ra>
